<compile_context>
chip_gen: v5e
topology: v5e:2x2
jax: 0.10.0
libtpu: 0.0.40
codegen_flags: <defaults>
</compile_context>

<pallas_src>
import math
import functools

import jax
import jax.numpy as jnp
from jax import lax
from jax.experimental import pallas as pl
from jax.experimental.pallas import tpu as pltpu

BF16 = jnp.bfloat16


# ----------------------------- in-kernel helpers -----------------------------

def _replication_matrix(num_heads, seq):
    """(H*S, S) bf16 0/1 matrix R with R[h*S + q, q'] = (q == q').

    R @ x replicates x (S, D) H times along the sublane axis -> (H*S, D).
    Built from 2-D iotas + compares only (no int div/mod, no concat/reshape)."""
    r = lax.broadcasted_iota(jnp.int32, (num_heads * seq, seq), 0)
    c = lax.broadcasted_iota(jnp.int32, (num_heads * seq, seq), 1)
    hit = (r == c)
    for h in range(1, num_heads):
        hit = jnp.logical_or(hit, r == c + h * seq)
    return jnp.where(hit, 1.0, 0.0).astype(BF16)


def _unstack_matrix(num_heads, seq):
    """(S, H*S) bf16; transpose of the replication matrix (head merge)."""
    r = lax.broadcasted_iota(jnp.int32, (seq, num_heads * seq), 0)
    c = lax.broadcasted_iota(jnp.int32, (seq, num_heads * seq), 1)
    hit = (c == r)
    for h in range(1, num_heads):
        hit = jnp.logical_or(hit, c == r + h * seq)
    return jnp.where(hit, 1.0, 0.0).astype(BF16)


def _head_mask(num_heads, seq, head_dim, d_pad):
    """(H*S, Dp) bool; mask[h*S + q, c] = (h*head_dim <= c < (h+1)*head_dim).

    Padding columns c >= num_heads*head_dim are always masked out."""
    r = lax.broadcasted_iota(jnp.int32, (num_heads * seq, d_pad), 0)
    c = lax.broadcasted_iota(jnp.int32, (num_heads * seq, d_pad), 1)
    m = None
    for h in range(num_heads):
        in_rows = jnp.logical_and(r >= h * seq, r < (h + 1) * seq)
        in_cols = jnp.logical_and(c >= h * head_dim, c < (h + 1) * head_dim)
        term = jnp.logical_and(in_rows, in_cols)
        m = term if m is None else jnp.logical_or(m, term)
    return m


def _qkv_fused(x, w_ref, b_ref, d_pad):
    """x: (S, D).  w_ref: (D, 3*Dp) bf16 (q|k|v segments, each 128-aligned,
    attention scale pre-folded into the q segment).  Returns q (f32), k, v (bf16),
    each (S, Dp) with zero padding columns."""
    proj = jnp.dot(x.astype(BF16), w_ref[...],
                   preferred_element_type=jnp.float32) + b_ref[...]
    q = proj[:, 0:d_pad]                              # 128-aligned lane slices
    k = proj[:, d_pad:2 * d_pad].astype(BF16)
    v = proj[:, 2 * d_pad:3 * d_pad].astype(BF16)
    return q, k, v


def _stack_queries(rep, mask, q):
    """(S, Dp) -> masked stacked queries (H*S, Dp) bf16 (head h rows keep only
    head-h columns)."""
    qs = jnp.dot(rep, q.astype(BF16), preferred_element_type=jnp.float32)
    return jnp.where(mask, qs, 0.0).astype(BF16)


def _attend(q_stack, k, v, mask):
    """One score matmul + one softmax + one PV matmul for ALL heads.

    q_stack: (H*Sq, Dp) bf16 masked; k, v: (Sk, Dp) bf16.
    Returns (probs (H*Sq, Sk) f32, masked stacked context (H*Sq, Dp) f32)."""
    s = lax.dot_general(q_stack, k, (((1,), (1,)), ((), ())),
                        preferred_element_type=jnp.float32)       # (H*Sq, Sk)
    m = jnp.max(s, axis=-1, keepdims=True)
    e = jnp.exp(s - m)
    p = e / jnp.sum(e, axis=-1, keepdims=True)   # exact: probs are returned outputs
    full = jnp.dot(p.astype(BF16), v, preferred_element_type=jnp.float32)
    return p, jnp.where(mask, full, 0.0)


# ----------------------------- fused kernels -----------------------------

def self_attn_kernel(x_ref, wqkv_ref, bqkv_ref, w_out_ref, b_out_ref,
                     *out_refs, num_heads, head_dim, d_pad, with_probs,
                     batch_block):
    sp = x_ref.shape[1]
    rep = _replication_matrix(num_heads, sp)
    unstack = _unstack_matrix(num_heads, sp)
    mask = _head_mask(num_heads, sp, head_dim, d_pad)
    for b in range(batch_block):
        x = x_ref[b]
        q, k, v = _qkv_fused(x, wqkv_ref, bqkv_ref, d_pad)
        qs = _stack_queries(rep, mask, q)
        p, cs = _attend(qs, k, v, mask)
        # head merge (unstack) + output projection
        ctx = jnp.dot(unstack, cs.astype(BF16),
                      preferred_element_type=jnp.float32)          # (Sp, Dp)
        out = jnp.dot(ctx.astype(BF16), w_out_ref[...],
                      preferred_element_type=jnp.float32) + b_out_ref[...]
        out_refs[0][b] = out.astype(out_refs[0].dtype)
        if with_probs:
            out_refs[1][b] = p.astype(out_refs[1].dtype)           # one store


def mm_attn_kernel(x_ref, m_ref,
                   wqkv_p_ref, bqkv_p_ref, wqkv_m_ref, bqkv_m_ref,
                   w_out_ref, b_out_ref, w_outm_ref, b_outm_ref,
                   w_fc_pp_ref, w_fc_pm_ref, b_fc_ref,
                   w_fcm_mm_ref, w_fcm_mp_ref, b_fcm_ref,
                   *out_refs, num_heads, head_dim, d_pad, with_probs,
                   batch_block):
    sp = x_ref.shape[1]
    sm = m_ref.shape[1]
    rep_p = _replication_matrix(num_heads, sp)
    rep_m = _replication_matrix(num_heads, sm)
    mask_p = _head_mask(num_heads, sp, head_dim, d_pad)
    mask_m = _head_mask(num_heads, sm, head_dim, d_pad)

    for b in range(batch_block):
        x = x_ref[b]          # (Sp, D) protein tokens
        m = m_ref[b]          # (Sm, D) molecule tokens

        q, k, v = _qkv_fused(x, wqkv_p_ref, bqkv_p_ref, d_pad)
        qm, km, vm = _qkv_fused(m, wqkv_m_ref, bqkv_m_ref, d_pad)

        qs_p = _stack_queries(rep_p, mask_p, q)      # (H*Sp, Dp)
        qs_m = _stack_queries(rep_m, mask_m, qm)     # (H*Sm, Dp)

        p_pp, cs_pp = _attend(qs_p, k, v, mask_p)    # prot -> prot  (weights)
        _,    cs_mm = _attend(qs_m, km, vm, mask_m)  # mol  -> mol
        _,    cs_pm = _attend(qs_p, km, vm, mask_p)  # prot -> mol
        p_mp, cs_mp = _attend(qs_m, k, v, mask_m)    # mol  -> prot  (guided)

        # fc over the concatenated sequence axis.  The head-merge is pre-folded
        # into the fc weights host-side (tiled H x along the contraction dim),
        # so the stacked masked contexts are contracted directly:
        #   fc(cat(ctx_a, ctx_b)) == Wa_tiled @ cs_a + Wb_tiled @ cs_b + bias.
        fc_prot = (jnp.dot(w_fc_pp_ref[...], cs_pp.astype(BF16),
                           preferred_element_type=jnp.float32)
                   + jnp.dot(w_fc_pm_ref[...], cs_mp.astype(BF16),
                             preferred_element_type=jnp.float32)
                   + b_fc_ref[...])                                  # (Sp, Dp)
        fc_mol = (jnp.dot(w_fcm_mm_ref[...], cs_mm.astype(BF16),
                          preferred_element_type=jnp.float32)
                  + jnp.dot(w_fcm_mp_ref[...], cs_pm.astype(BF16),
                            preferred_element_type=jnp.float32)
                  + b_fcm_ref[...])                                  # (Sm, Dp)

        out_prot = jnp.dot(fc_prot.astype(BF16), w_out_ref[...],
                           preferred_element_type=jnp.float32) + b_out_ref[...]
        out_mol = jnp.dot(fc_mol.astype(BF16), w_outm_ref[...],
                          preferred_element_type=jnp.float32) + b_outm_ref[...]

        out_refs[0][b] = out_prot.astype(out_refs[0].dtype)
        out_refs[1][b] = out_mol.astype(out_refs[1].dtype)
        if with_probs:
            out_refs[2][b] = p_pp.astype(out_refs[2].dtype)   # weights (stacked)
            out_refs[3][b] = p_mp.astype(out_refs[3].dtype)   # guided  (stacked)


# ----------------------------- wrapper -----------------------------

def attention_forward(params, hidden_states, mol=None, *, num_heads, vis=True,
                      batch_block=1):
    B, Sp, D = hidden_states.shape
    head_dim = D // num_heads
    scale = 1.0 / math.sqrt(head_dim)
    dtype = hidden_states.dtype
    Dp = ((D + 127) // 128) * 128            # pad each q/k/v segment to 128 lanes

    assert B % batch_block == 0, "batch_block must divide the batch"
    grid = (B // batch_block,)
    sem = ("parallel",)   # >=2 grid steps -> both v7x TensorCores; no-op on v5e/v6e

    def fuse_qkv(wq, bq, wk, bk, wv, bv):
        # (D, 3*Dp) bf16 weight with the attention scale folded into the q
        # segment; padding columns are zero so they never affect contractions.
        w = jnp.zeros((D, 3 * Dp), jnp.float32)
        w = w.at[:, 0:D].set(wq * scale)
        w = w.at[:, Dp:Dp + D].set(wk)
        w = w.at[:, 2 * Dp:2 * Dp + D].set(wv)
        b = jnp.zeros((1, 3 * Dp), jnp.float32)
        b = b.at[0, 0:D].set(bq * scale)
        b = b.at[0, Dp:Dp + D].set(bk)
        b = b.at[0, 2 * Dp:2 * Dp + D].set(bv)
        return w.astype(BF16), b

    def pad_out_weight(w):   # (D, D) -> (Dp, D), zero rows in the padding region
        return jnp.zeros((Dp, D), jnp.float32).at[0:D, :].set(w).astype(BF16)

    w_qkv_p, b_qkv_p = fuse_qkv(params['q_w'], params['q_b'],
                                params['k_w'], params['k_b'],
                                params['v_w'], params['v_b'])
    w_out = pad_out_weight(params['out_w'])
    b_out = params['out_b'][None, :]

    # NOTE: dropout (attn_dropout*, proj_dropout*) is identity (eval mode).

    if mol is None:
        out_shape = [jax.ShapeDtypeStruct((B, Sp, D), dtype)]
        out_specs = [pl.BlockSpec((batch_block, Sp, D), lambda b: (b, 0, 0))]
        if vis:
            out_shape.append(jax.ShapeDtypeStruct((B, num_heads * Sp, Sp), dtype))
            out_specs.append(pl.BlockSpec((batch_block, num_heads * Sp, Sp),
                                          lambda b: (b, 0, 0)))
        res = pl.pallas_call(
            functools.partial(self_attn_kernel, num_heads=num_heads,
                              head_dim=head_dim, d_pad=Dp, with_probs=vis,
                              batch_block=batch_block),
            out_shape=tuple(out_shape),
            grid=grid,
            in_specs=[
                pl.BlockSpec((batch_block, Sp, D), lambda b: (b, 0, 0)),  # x
                pl.BlockSpec((D, 3 * Dp), lambda b: (0, 0)),              # w_qkv
                pl.BlockSpec((1, 3 * Dp), lambda b: (0, 0)),              # b_qkv
                pl.BlockSpec((Dp, D), lambda b: (0, 0)),                  # w_out
                pl.BlockSpec((1, D), lambda b: (0, 0)),                   # b_out
            ],
            out_specs=tuple(out_specs),
            compiler_params=pltpu.CompilerParams(dimension_semantics=sem),
        )(hidden_states, w_qkv_p, b_qkv_p, w_out, b_out)
        attn_out = res[0]
        weights = res[1].reshape(B, num_heads, Sp, Sp) if vis else None
        return attn_out, weights, None

    Sm = mol.shape[1]

    w_qkv_m, b_qkv_m = fuse_qkv(params['qm_w'], params['qm_b'],
                                params['km_w'], params['km_b'],
                                params['vm_w'], params['vm_b'])
    w_outm = pad_out_weight(params['outm_w'])
    b_outm = params['outm_b'][None, :]

    # fc weights: pre-split by concat segment, transposed, and tiled H x along
    # the contraction dim so the kernel contracts stacked contexts directly
    # (the head merge is folded in here at zero runtime cost).
    w_fc_pp = jnp.tile(params['fc_w'][:Sp, :].T, (1, num_heads)).astype(BF16)    # (Sp, H*Sp)
    w_fc_pm = jnp.tile(params['fc_w'][Sp:, :].T, (1, num_heads)).astype(BF16)    # (Sp, H*Sm)
    b_fc = params['fc_b'][:, None]                                               # (Sp, 1)
    w_fcm_mm = jnp.tile(params['fcm_w'][:Sm, :].T, (1, num_heads)).astype(BF16)  # (Sm, H*Sm)
    w_fcm_mp = jnp.tile(params['fcm_w'][Sm:, :].T, (1, num_heads)).astype(BF16)  # (Sm, H*Sp)
    b_fcm = params['fcm_b'][:, None]                                             # (Sm, 1)

    out_shape = [jax.ShapeDtypeStruct((B, Sp, D), dtype),
                 jax.ShapeDtypeStruct((B, Sm, D), dtype)]
    out_specs = [pl.BlockSpec((batch_block, Sp, D), lambda b: (b, 0, 0)),
                 pl.BlockSpec((batch_block, Sm, D), lambda b: (b, 0, 0))]
    if vis:
        out_shape += [jax.ShapeDtypeStruct((B, num_heads * Sp, Sp), dtype),
                      jax.ShapeDtypeStruct((B, num_heads * Sm, Sp), dtype)]
        out_specs += [pl.BlockSpec((batch_block, num_heads * Sp, Sp), lambda b: (b, 0, 0)),
                      pl.BlockSpec((batch_block, num_heads * Sm, Sp), lambda b: (b, 0, 0))]

    res = pl.pallas_call(
        functools.partial(mm_attn_kernel, num_heads=num_heads,
                          head_dim=head_dim, d_pad=Dp, with_probs=vis,
                          batch_block=batch_block),
        out_shape=tuple(out_shape),
        grid=grid,
        in_specs=[
            pl.BlockSpec((batch_block, Sp, D), lambda b: (b, 0, 0)),   # hidden_states
            pl.BlockSpec((batch_block, Sm, D), lambda b: (b, 0, 0)),   # mol
            pl.BlockSpec((D, 3 * Dp), lambda b: (0, 0)),               # w_qkv_p
            pl.BlockSpec((1, 3 * Dp), lambda b: (0, 0)),               # b_qkv_p
            pl.BlockSpec((D, 3 * Dp), lambda b: (0, 0)),               # w_qkv_m
            pl.BlockSpec((1, 3 * Dp), lambda b: (0, 0)),               # b_qkv_m
            pl.BlockSpec((Dp, D), lambda b: (0, 0)),                   # w_out
            pl.BlockSpec((1, D), lambda b: (0, 0)),                    # b_out
            pl.BlockSpec((Dp, D), lambda b: (0, 0)),                   # w_outm
            pl.BlockSpec((1, D), lambda b: (0, 0)),                    # b_outm
            pl.BlockSpec((Sp, num_heads * Sp), lambda b: (0, 0)),      # w_fc_pp (tiled)
            pl.BlockSpec((Sp, num_heads * Sm), lambda b: (0, 0)),      # w_fc_pm (tiled)
            pl.BlockSpec((Sp, 1), lambda b: (0, 0)),                   # b_fc
            pl.BlockSpec((Sm, num_heads * Sm), lambda b: (0, 0)),      # w_fcm_mm (tiled)
            pl.BlockSpec((Sm, num_heads * Sp), lambda b: (0, 0)),      # w_fcm_mp (tiled)
            pl.BlockSpec((Sm, 1), lambda b: (0, 0)),                   # b_fcm
        ],
        out_specs=tuple(out_specs),
        compiler_params=pltpu.CompilerParams(dimension_semantics=sem),
    )(hidden_states, mol, w_qkv_p, b_qkv_p, w_qkv_m, b_qkv_m,
      w_out, b_out, w_outm, b_outm,
      w_fc_pp, w_fc_pm, b_fc, w_fcm_mm, w_fcm_mp, b_fcm)

    out_prot, out_mol = res[0], res[1]
    weights = res[2].reshape(B, num_heads, Sp, Sp) if vis else None
    guided_weights = res[3].reshape(B, num_heads, Sm, Sp) if vis else None
    return out_prot, out_mol, weights, guided_weights


# ----------------------------- params & pure-JAX reference -----------------------------

def init_params(key, embed_dim, mol_len, feat_len):
    keys = jax.random.split(key, 20)
    D = embed_dim
    Sp = feat_len + 1
    Sm = mol_len
    Stot = Sp + Sm

    def lin(kw, kb, din, dout, s=0.05):
        return (jax.random.normal(kw, (din, dout), jnp.float32) * s,
                jax.random.normal(kb, (dout,), jnp.float32) * s)

    p = {}
    p['q_w'], p['q_b'] = lin(keys[0], keys[1], D, D)
    p['k_w'], p['k_b'] = lin(keys[2], keys[3], D, D)
    p['v_w'], p['v_b'] = lin(keys[4], keys[5], D, D)
    p['qm_w'], p['qm_b'] = lin(keys[6], keys[7], D, D)
    p['km_w'], p['km_b'] = lin(keys[8], keys[9], D, D)
    p['vm_w'], p['vm_b'] = lin(keys[10], keys[11], D, D)
    p['out_w'], p['out_b'] = lin(keys[12], keys[13], D, D)
    p['outm_w'], p['outm_b'] = lin(keys[14], keys[15], D, D)
    p['fc_w'], p['fc_b'] = lin(keys[16], keys[17], Stot, Sp)     # fc: (mol+feat+1) -> feat+1
    p['fcm_w'], p['fcm_b'] = lin(keys[18], keys[19], Stot, Sm)   # fc_mol: -> mol_len
    return p


def reference_forward(params, hidden_states, mol=None, *, num_heads):
    """Pure-JAX mirror of the PyTorch forward (eval mode) for correctness checks."""
    D = hidden_states.shape[-1]
    d = D // num_heads
    scale = 1.0 / math.sqrt(d)

    def lin(x, w, b):
        return jnp.einsum('bsi,io->bso', x, w) + b

    def split_heads(x):
        B, S, _ = x.shape
        return x.reshape(B, S, num_heads, d).transpose(0, 2, 1, 3)

    def attn(qh, kh, vh):
        s = jnp.einsum('bhqd,bhkd->bhqk', qh, kh) * scale
        p = jax.nn.softmax(s, axis=-1)
        c = jnp.einsum('bhqk,bhkd->bhqd', p, vh)
        B, H, S, _ = c.shape
        return c.transpose(0, 2, 1, 3).reshape(B, S, H * d), p

    q = split_heads(lin(hidden_states, params['q_w'], params['q_b']))
    k = split_heads(lin(hidden_states, params['k_w'], params['k_b']))
    v = split_heads(lin(hidden_states, params['v_w'], params['v_b']))

    if mol is None:
        c, p = attn(q, k, v)
        return lin(c, params['out_w'], params['out_b']), p, None

    qm = split_heads(lin(mol, params['qm_w'], params['qm_b']))
    km = split_heads(lin(mol, params['km_w'], params['km_b']))
    vm = split_heads(lin(mol, params['vm_w'], params['vm_b']))

    c_prot, p_prot = attn(q, k, v)
    c_mol, _ = attn(qm, km, vm)
    c_pm, _ = attn(q, km, vm)
    c_mp, p_mp = attn(qm, k, v)

    cat_p = jnp.concatenate([c_prot, c_mp], axis=1).transpose(0, 2, 1)
    o_p = (jnp.einsum('bdt,ts->bds', cat_p, params['fc_w']) + params['fc_b']).transpose(0, 2, 1)
    o_p = lin(o_p, params['out_w'], params['out_b'])

    cat_m = jnp.concatenate([c_mol, c_pm], axis=1).transpose(0, 2, 1)
    o_m = (jnp.einsum('bdt,ts->bds', cat_m, params['fcm_w']) + params['fcm_b']).transpose(0, 2, 1)
    o_m = lin(o_m, params['outm_w'], params['outm_b'])

    return o_p, o_m, p_prot, p_mp


# ----------------------------- main -----------------------------

if __name__ == "__main__":
    EMBED_DIM = 32
    NUM_HEADS = 4
    FEAT_LEN = 8
    MOL_LEN = 8
    BATCH = 2

    key = jax.random.PRNGKey(0)
    k_param, k_h, k_m = jax.random.split(key, 3)

    params = init_params(k_param, EMBED_DIM, MOL_LEN, FEAT_LEN)
    hidden_states = jax.random.normal(k_h, (BATCH, FEAT_LEN + 1, EMBED_DIM), jnp.float32)
    mol = jax.random.normal(k_m, (BATCH, MOL_LEN, EMBED_DIM), jnp.float32)

    fwd = jax.jit(attention_forward,
                  static_argnames=("num_heads", "vis", "batch_block"))

    # batch_block=1 -> 2 parallel grid steps (both v7x TensorCores).
    # On single-TC v5e/v6e, batch_block=BATCH collapses per-step overhead.
    out_prot, out_mol, weights, guided_weights = fwd(
        params, hidden_states, mol, num_heads=NUM_HEADS, vis=True, batch_block=1)
    jax.block_until_ready((out_prot, out_mol, weights, guided_weights))

    attn_out, w_self, _ = fwd(params, hidden_states, None,
                              num_heads=NUM_HEADS, vis=True, batch_block=1)
    jax.block_until_ready((attn_out, w_self))

    # shape checks
    assert out_prot.shape == (BATCH, FEAT_LEN + 1, EMBED_DIM)
    assert out_mol.shape == (BATCH, MOL_LEN, EMBED_DIM)
    assert weights.shape == (BATCH, NUM_HEADS, FEAT_LEN + 1, FEAT_LEN + 1)
    assert guided_weights.shape == (BATCH, NUM_HEADS, MOL_LEN, FEAT_LEN + 1)
    assert attn_out.shape == (BATCH, FEAT_LEN + 1, EMBED_DIM)

    # numerical check vs. a pure-JAX (f32) reference of the PyTorch forward
    r_prot, r_mol, r_w, r_gw = reference_forward(params, hidden_states, mol, num_heads=NUM_HEADS)
    ra_out, ra_w, _ = reference_forward(params, hidden_states, None, num_heads=NUM_HEADS)

    def maxdiff(a, b):
        return float(jnp.max(jnp.abs(a - b)))

    tol = 2e-2  # bf16 MXU operands vs f32 reference
    assert maxdiff(out_prot, r_prot) < tol, maxdiff(out_prot, r_prot)
    assert maxdiff(out_mol, r_mol) < tol, maxdiff(out_mol, r_mol)
    assert maxdiff(weights, r_w) < tol, maxdiff(weights, r_w)
    assert maxdiff(guided_weights, r_gw) < tol, maxdiff(guided_weights, r_gw)
    assert maxdiff(attn_out, ra_out) < tol, maxdiff(attn_out, ra_out)
    assert maxdiff(w_self, ra_w) < tol, maxdiff(w_self, ra_w)

    print("KERNEL_OK")
</pallas_src>

<mosaic_0001>
module attributes {stable_mosaic.version = 11 : i64} {
  func.func @mm_attn_kernel(%arg0: i32, %arg1: memref<1x9x32xf32, #tpu.memory_space<vmem>>, %arg2: memref<1x8x32xf32, #tpu.memory_space<vmem>>, %arg3: memref<32x384xbf16, #tpu.memory_space<vmem>>, %arg4: memref<1x384xf32, #tpu.memory_space<vmem>>, %arg5: memref<32x384xbf16, #tpu.memory_space<vmem>>, %arg6: memref<1x384xf32, #tpu.memory_space<vmem>>, %arg7: memref<128x32xbf16, #tpu.memory_space<vmem>>, %arg8: memref<1x32xf32, #tpu.memory_space<vmem>>, %arg9: memref<128x32xbf16, #tpu.memory_space<vmem>>, %arg10: memref<1x32xf32, #tpu.memory_space<vmem>>, %arg11: memref<9x36xbf16, #tpu.memory_space<vmem>>, %arg12: memref<9x32xbf16, #tpu.memory_space<vmem>>, %arg13: memref<9x1xf32, #tpu.memory_space<vmem>>, %arg14: memref<8x32xbf16, #tpu.memory_space<vmem>>, %arg15: memref<8x36xbf16, #tpu.memory_space<vmem>>, %arg16: memref<8x1xf32, #tpu.memory_space<vmem>>, %arg17: memref<1x9x32xf32, #tpu.memory_space<vmem>>, %arg18: memref<1x8x32xf32, #tpu.memory_space<vmem>>, %arg19: memref<1x36x9xf32, #tpu.memory_space<vmem>>, %arg20: memref<1x32x9xf32, #tpu.memory_space<vmem>>) attributes {dimension_semantics = [#tpu.dimension_semantics<parallel>], iteration_bounds = array<i64: 2>, scalar_prefetch = 0 : i64, scratch_operands = 0 : i64, tpu.core_type = #tpu.core_type<tc>, window_params = [{transform_indices = @transform_0, window_bounds = array<i64: 1, 9, 32>}, {transform_indices = @transform_1, window_bounds = array<i64: 1, 8, 32>}, {pipeline_mode = #tpu.pipeline_mode<synchronous>, transform_indices = @transform_2, window_bounds = array<i64: 32, 384>}, {pipeline_mode = #tpu.pipeline_mode<synchronous>, transform_indices = @transform_3, window_bounds = array<i64: 1, 384>}, {pipeline_mode = #tpu.pipeline_mode<synchronous>, transform_indices = @transform_4, window_bounds = array<i64: 32, 384>}, {pipeline_mode = #tpu.pipeline_mode<synchronous>, transform_indices = @transform_5, window_bounds = array<i64: 1, 384>}, {pipeline_mode = #tpu.pipeline_mode<synchronous>, transform_indices = @transform_6, window_bounds = array<i64: 128, 32>}, {pipeline_mode = #tpu.pipeline_mode<synchronous>, transform_indices = @transform_7, window_bounds = array<i64: 1, 32>}, {pipeline_mode = #tpu.pipeline_mode<synchronous>, transform_indices = @transform_8, window_bounds = array<i64: 128, 32>}, {pipeline_mode = #tpu.pipeline_mode<synchronous>, transform_indices = @transform_9, window_bounds = array<i64: 1, 32>}, {pipeline_mode = #tpu.pipeline_mode<synchronous>, transform_indices = @transform_10, window_bounds = array<i64: 9, 36>}, {pipeline_mode = #tpu.pipeline_mode<synchronous>, transform_indices = @transform_11, window_bounds = array<i64: 9, 32>}, {pipeline_mode = #tpu.pipeline_mode<synchronous>, transform_indices = @transform_12, window_bounds = array<i64: 9, 1>}, {pipeline_mode = #tpu.pipeline_mode<synchronous>, transform_indices = @transform_13, window_bounds = array<i64: 8, 32>}, {pipeline_mode = #tpu.pipeline_mode<synchronous>, transform_indices = @transform_14, window_bounds = array<i64: 8, 36>}, {pipeline_mode = #tpu.pipeline_mode<synchronous>, transform_indices = @transform_15, window_bounds = array<i64: 8, 1>}, {transform_indices = @transform_16, window_bounds = array<i64: 1, 9, 32>}, {transform_indices = @transform_17, window_bounds = array<i64: 1, 8, 32>}, {transform_indices = @transform_18, window_bounds = array<i64: 1, 36, 9>}, {transform_indices = @transform_19, window_bounds = array<i64: 1, 32, 9>}]} {
    %0 = tpu.iota {dimensions = array<i32: 0>} : vector<36x9xi32>
    %1 = tpu.iota {dimensions = array<i32: 1>} : vector<36x9xi32>
    %2 = arith.cmpi eq, %0, %1 : vector<36x9xi32>
    %c9_i32 = arith.constant 9 : i32
    %3 = vector.broadcast %c9_i32 : i32 to vector<36x9xi32>
    %4 = arith.addi %1, %3 : vector<36x9xi32>
    %5 = arith.cmpi eq, %0, %4 : vector<36x9xi32>
    %6 = arith.ori %2, %5 : vector<36x9xi1>
    %c18_i32 = arith.constant 18 : i32
    %7 = vector.broadcast %c18_i32 : i32 to vector<36x9xi32>
    %8 = arith.addi %1, %7 : vector<36x9xi32>
    %9 = arith.cmpi eq, %0, %8 : vector<36x9xi32>
    %10 = arith.ori %6, %9 : vector<36x9xi1>
    %c27_i32 = arith.constant 27 : i32
    %11 = vector.broadcast %c27_i32 : i32 to vector<36x9xi32>
    %12 = arith.addi %1, %11 : vector<36x9xi32>
    %13 = arith.cmpi eq, %0, %12 : vector<36x9xi32>
    %14 = arith.ori %10, %13 : vector<36x9xi1>
    %cst = arith.constant 1.000000e+00 : f32
    %cst_0 = arith.constant 0.000000e+00 : f32
    %15 = vector.broadcast %cst : f32 to vector<36x9xf32>
    %16 = vector.broadcast %cst_0 : f32 to vector<36x9xf32>
    %17 = arith.select %14, %15, %16 : vector<36x9xi1>, vector<36x9xf32>
    %18 = arith.truncf %17 : vector<36x9xf32> to vector<36x9xbf16>
    %19 = tpu.iota {dimensions = array<i32: 0>} : vector<32x8xi32>
    %20 = tpu.iota {dimensions = array<i32: 1>} : vector<32x8xi32>
    %21 = arith.cmpi eq, %19, %20 : vector<32x8xi32>
    %c8_i32 = arith.constant 8 : i32
    %22 = vector.broadcast %c8_i32 : i32 to vector<32x8xi32>
    %23 = arith.addi %20, %22 : vector<32x8xi32>
    %24 = arith.cmpi eq, %19, %23 : vector<32x8xi32>
    %25 = arith.ori %21, %24 : vector<32x8xi1>
    %c16_i32 = arith.constant 16 : i32
    %26 = vector.broadcast %c16_i32 : i32 to vector<32x8xi32>
    %27 = arith.addi %20, %26 : vector<32x8xi32>
    %28 = arith.cmpi eq, %19, %27 : vector<32x8xi32>
    %29 = arith.ori %25, %28 : vector<32x8xi1>
    %c24_i32 = arith.constant 24 : i32
    %30 = vector.broadcast %c24_i32 : i32 to vector<32x8xi32>
    %31 = arith.addi %20, %30 : vector<32x8xi32>
    %32 = arith.cmpi eq, %19, %31 : vector<32x8xi32>
    %33 = arith.ori %29, %32 : vector<32x8xi1>
    %cst_1 = arith.constant 1.000000e+00 : f32
    %cst_2 = arith.constant 0.000000e+00 : f32
    %34 = vector.broadcast %cst_1 : f32 to vector<32x8xf32>
    %35 = vector.broadcast %cst_2 : f32 to vector<32x8xf32>
    %36 = arith.select %33, %34, %35 : vector<32x8xi1>, vector<32x8xf32>
    %37 = arith.truncf %36 : vector<32x8xf32> to vector<32x8xbf16>
    %38 = tpu.iota {dimensions = array<i32: 0>} : vector<36x128xi32>
    %39 = tpu.iota {dimensions = array<i32: 1>} : vector<36x128xi32>
    %c0_i32 = arith.constant 0 : i32
    %40 = vector.broadcast %c0_i32 : i32 to vector<36x128xi32>
    %41 = arith.cmpi sge, %38, %40 : vector<36x128xi32>
    %c9_i32_3 = arith.constant 9 : i32
    %42 = vector.broadcast %c9_i32_3 : i32 to vector<36x128xi32>
    %43 = arith.cmpi slt, %38, %42 : vector<36x128xi32>
    %44 = arith.andi %41, %43 : vector<36x128xi1>
    %c0_i32_4 = arith.constant 0 : i32
    %45 = vector.broadcast %c0_i32_4 : i32 to vector<36x128xi32>
    %46 = arith.cmpi sge, %39, %45 : vector<36x128xi32>
    %c8_i32_5 = arith.constant 8 : i32
    %47 = vector.broadcast %c8_i32_5 : i32 to vector<36x128xi32>
    %48 = arith.cmpi slt, %39, %47 : vector<36x128xi32>
    %49 = arith.andi %46, %48 : vector<36x128xi1>
    %50 = arith.andi %44, %49 : vector<36x128xi1>
    %c9_i32_6 = arith.constant 9 : i32
    %51 = vector.broadcast %c9_i32_6 : i32 to vector<36x128xi32>
    %52 = arith.cmpi sge, %38, %51 : vector<36x128xi32>
    %c18_i32_7 = arith.constant 18 : i32
    %53 = vector.broadcast %c18_i32_7 : i32 to vector<36x128xi32>
    %54 = arith.cmpi slt, %38, %53 : vector<36x128xi32>
    %55 = arith.andi %52, %54 : vector<36x128xi1>
    %c8_i32_8 = arith.constant 8 : i32
    %56 = vector.broadcast %c8_i32_8 : i32 to vector<36x128xi32>
    %57 = arith.cmpi sge, %39, %56 : vector<36x128xi32>
    %c16_i32_9 = arith.constant 16 : i32
    %58 = vector.broadcast %c16_i32_9 : i32 to vector<36x128xi32>
    %59 = arith.cmpi slt, %39, %58 : vector<36x128xi32>
    %60 = arith.andi %57, %59 : vector<36x128xi1>
    %61 = arith.andi %55, %60 : vector<36x128xi1>
    %62 = arith.ori %50, %61 : vector<36x128xi1>
    %c18_i32_10 = arith.constant 18 : i32
    %63 = vector.broadcast %c18_i32_10 : i32 to vector<36x128xi32>
    %64 = arith.cmpi sge, %38, %63 : vector<36x128xi32>
    %c27_i32_11 = arith.constant 27 : i32
    %65 = vector.broadcast %c27_i32_11 : i32 to vector<36x128xi32>
    %66 = arith.cmpi slt, %38, %65 : vector<36x128xi32>
    %67 = arith.andi %64, %66 : vector<36x128xi1>
    %c16_i32_12 = arith.constant 16 : i32
    %68 = vector.broadcast %c16_i32_12 : i32 to vector<36x128xi32>
    %69 = arith.cmpi sge, %39, %68 : vector<36x128xi32>
    %c24_i32_13 = arith.constant 24 : i32
    %70 = vector.broadcast %c24_i32_13 : i32 to vector<36x128xi32>
    %71 = arith.cmpi slt, %39, %70 : vector<36x128xi32>
    %72 = arith.andi %69, %71 : vector<36x128xi1>
    %73 = arith.andi %67, %72 : vector<36x128xi1>
    %74 = arith.ori %62, %73 : vector<36x128xi1>
    %c27_i32_14 = arith.constant 27 : i32
    %75 = vector.broadcast %c27_i32_14 : i32 to vector<36x128xi32>
    %76 = arith.cmpi sge, %38, %75 : vector<36x128xi32>
    %c36_i32 = arith.constant 36 : i32
    %77 = vector.broadcast %c36_i32 : i32 to vector<36x128xi32>
    %78 = arith.cmpi slt, %38, %77 : vector<36x128xi32>
    %79 = arith.andi %76, %78 : vector<36x128xi1>
    %c24_i32_15 = arith.constant 24 : i32
    %80 = vector.broadcast %c24_i32_15 : i32 to vector<36x128xi32>
    %81 = arith.cmpi sge, %39, %80 : vector<36x128xi32>
    %c32_i32 = arith.constant 32 : i32
    %82 = vector.broadcast %c32_i32 : i32 to vector<36x128xi32>
    %83 = arith.cmpi slt, %39, %82 : vector<36x128xi32>
    %84 = arith.andi %81, %83 : vector<36x128xi1>
    %85 = arith.andi %79, %84 : vector<36x128xi1>
    %86 = arith.ori %74, %85 : vector<36x128xi1>
    %87 = tpu.iota {dimensions = array<i32: 0>} : vector<32x128xi32>
    %88 = tpu.iota {dimensions = array<i32: 1>} : vector<32x128xi32>
    %c0_i32_16 = arith.constant 0 : i32
    %89 = vector.broadcast %c0_i32_16 : i32 to vector<32x128xi32>
    %90 = arith.cmpi sge, %87, %89 : vector<32x128xi32>
    %c8_i32_17 = arith.constant 8 : i32
    %91 = vector.broadcast %c8_i32_17 : i32 to vector<32x128xi32>
    %92 = arith.cmpi slt, %87, %91 : vector<32x128xi32>
    %93 = arith.andi %90, %92 : vector<32x128xi1>
    %c0_i32_18 = arith.constant 0 : i32
    %94 = vector.broadcast %c0_i32_18 : i32 to vector<32x128xi32>
    %95 = arith.cmpi sge, %88, %94 : vector<32x128xi32>
    %c8_i32_19 = arith.constant 8 : i32
    %96 = vector.broadcast %c8_i32_19 : i32 to vector<32x128xi32>
    %97 = arith.cmpi slt, %88, %96 : vector<32x128xi32>
    %98 = arith.andi %95, %97 : vector<32x128xi1>
    %99 = arith.andi %93, %98 : vector<32x128xi1>
    %c8_i32_20 = arith.constant 8 : i32
    %100 = vector.broadcast %c8_i32_20 : i32 to vector<32x128xi32>
    %101 = arith.cmpi sge, %87, %100 : vector<32x128xi32>
    %c16_i32_21 = arith.constant 16 : i32
    %102 = vector.broadcast %c16_i32_21 : i32 to vector<32x128xi32>
    %103 = arith.cmpi slt, %87, %102 : vector<32x128xi32>
    %104 = arith.andi %101, %103 : vector<32x128xi1>
    %c8_i32_22 = arith.constant 8 : i32
    %105 = vector.broadcast %c8_i32_22 : i32 to vector<32x128xi32>
    %106 = arith.cmpi sge, %88, %105 : vector<32x128xi32>
    %c16_i32_23 = arith.constant 16 : i32
    %107 = vector.broadcast %c16_i32_23 : i32 to vector<32x128xi32>
    %108 = arith.cmpi slt, %88, %107 : vector<32x128xi32>
    %109 = arith.andi %106, %108 : vector<32x128xi1>
    %110 = arith.andi %104, %109 : vector<32x128xi1>
    %111 = arith.ori %99, %110 : vector<32x128xi1>
    %c16_i32_24 = arith.constant 16 : i32
    %112 = vector.broadcast %c16_i32_24 : i32 to vector<32x128xi32>
    %113 = arith.cmpi sge, %87, %112 : vector<32x128xi32>
    %c24_i32_25 = arith.constant 24 : i32
    %114 = vector.broadcast %c24_i32_25 : i32 to vector<32x128xi32>
    %115 = arith.cmpi slt, %87, %114 : vector<32x128xi32>
    %116 = arith.andi %113, %115 : vector<32x128xi1>
    %c16_i32_26 = arith.constant 16 : i32
    %117 = vector.broadcast %c16_i32_26 : i32 to vector<32x128xi32>
    %118 = arith.cmpi sge, %88, %117 : vector<32x128xi32>
    %c24_i32_27 = arith.constant 24 : i32
    %119 = vector.broadcast %c24_i32_27 : i32 to vector<32x128xi32>
    %120 = arith.cmpi slt, %88, %119 : vector<32x128xi32>
    %121 = arith.andi %118, %120 : vector<32x128xi1>
    %122 = arith.andi %116, %121 : vector<32x128xi1>
    %123 = arith.ori %111, %122 : vector<32x128xi1>
    %c24_i32_28 = arith.constant 24 : i32
    %124 = vector.broadcast %c24_i32_28 : i32 to vector<32x128xi32>
    %125 = arith.cmpi sge, %87, %124 : vector<32x128xi32>
    %c32_i32_29 = arith.constant 32 : i32
    %126 = vector.broadcast %c32_i32_29 : i32 to vector<32x128xi32>
    %127 = arith.cmpi slt, %87, %126 : vector<32x128xi32>
    %128 = arith.andi %125, %127 : vector<32x128xi1>
    %c24_i32_30 = arith.constant 24 : i32
    %129 = vector.broadcast %c24_i32_30 : i32 to vector<32x128xi32>
    %130 = arith.cmpi sge, %88, %129 : vector<32x128xi32>
    %c32_i32_31 = arith.constant 32 : i32
    %131 = vector.broadcast %c32_i32_31 : i32 to vector<32x128xi32>
    %132 = arith.cmpi slt, %88, %131 : vector<32x128xi32>
    %133 = arith.andi %130, %132 : vector<32x128xi1>
    %134 = arith.andi %128, %133 : vector<32x128xi1>
    %135 = arith.ori %123, %134 : vector<32x128xi1>
    %c0 = arith.constant 0 : index
    %c0_32 = arith.constant 0 : index
    %c0_33 = arith.constant 0 : index
    %136 = vector.load %arg1[%c0, %c0_32, %c0_33] : memref<1x9x32xf32, #tpu.memory_space<vmem>>, vector<1x9x32xf32>
    %137 = vector.shape_cast %136 : vector<1x9x32xf32> to vector<9x32xf32>
    %c0_34 = arith.constant 0 : index
    %c0_35 = arith.constant 0 : index
    %c0_36 = arith.constant 0 : index
    %138 = vector.load %arg2[%c0_34, %c0_35, %c0_36] : memref<1x8x32xf32, #tpu.memory_space<vmem>>, vector<1x8x32xf32>
    %139 = vector.shape_cast %138 : vector<1x8x32xf32> to vector<8x32xf32>
    %140 = arith.truncf %137 : vector<9x32xf32> to vector<9x32xbf16>
    %c0_37 = arith.constant 0 : index
    %c0_38 = arith.constant 0 : index
    %141 = vector.load %arg3[%c0_37, %c0_38] : memref<32x384xbf16, #tpu.memory_space<vmem>>, vector<32x384xbf16>
    %cst_39 = arith.constant dense<0.000000e+00> : vector<9x384xf32>
    %142 = tpu.matmul %140, %141, %cst_39 {dimension_numbers = #tpu.dot_dimension_numbers<[1], [0], [0], [1], [0, 0, 1, 1], [], []>} : vector<9x32xbf16>, vector<32x384xbf16>, vector<9x384xf32> -> vector<9x384xf32>
    %c0_40 = arith.constant 0 : index
    %c0_41 = arith.constant 0 : index
    %143 = vector.load %arg4[%c0_40, %c0_41] : memref<1x384xf32, #tpu.memory_space<vmem>>, vector<1x384xf32>
    %144 = vector.broadcast %143 : vector<1x384xf32> to vector<9x384xf32>
    %145 = arith.addf %142, %144 : vector<9x384xf32>
    %146 = vector.extract_strided_slice %145 {offsets = [0, 0], sizes = [9, 128], strides = [1, 1]} : vector<9x384xf32> to vector<9x128xf32>
    %147 = vector.extract_strided_slice %145 {offsets = [0, 128], sizes = [9, 128], strides = [1, 1]} : vector<9x384xf32> to vector<9x128xf32>
    %148 = arith.truncf %147 : vector<9x128xf32> to vector<9x128xbf16>
    %149 = vector.extract_strided_slice %145 {offsets = [0, 256], sizes = [9, 128], strides = [1, 1]} : vector<9x384xf32> to vector<9x128xf32>
    %150 = arith.truncf %149 : vector<9x128xf32> to vector<9x128xbf16>
    %151 = arith.truncf %139 : vector<8x32xf32> to vector<8x32xbf16>
    %c0_42 = arith.constant 0 : index
    %c0_43 = arith.constant 0 : index
    %152 = vector.load %arg5[%c0_42, %c0_43] : memref<32x384xbf16, #tpu.memory_space<vmem>>, vector<32x384xbf16>
    %cst_44 = arith.constant dense<0.000000e+00> : vector<8x384xf32>
    %153 = tpu.matmul %151, %152, %cst_44 {dimension_numbers = #tpu.dot_dimension_numbers<[1], [0], [0], [1], [0, 0, 1, 1], [], []>} : vector<8x32xbf16>, vector<32x384xbf16>, vector<8x384xf32> -> vector<8x384xf32>
    %c0_45 = arith.constant 0 : index
    %c0_46 = arith.constant 0 : index
    %154 = vector.load %arg6[%c0_45, %c0_46] : memref<1x384xf32, #tpu.memory_space<vmem>>, vector<1x384xf32>
    %155 = vector.broadcast %154 : vector<1x384xf32> to vector<8x384xf32>
    %156 = arith.addf %153, %155 : vector<8x384xf32>
    %157 = vector.extract_strided_slice %156 {offsets = [0, 0], sizes = [8, 128], strides = [1, 1]} : vector<8x384xf32> to vector<8x128xf32>
    %158 = vector.extract_strided_slice %156 {offsets = [0, 128], sizes = [8, 128], strides = [1, 1]} : vector<8x384xf32> to vector<8x128xf32>
    %159 = arith.truncf %158 : vector<8x128xf32> to vector<8x128xbf16>
    %160 = vector.extract_strided_slice %156 {offsets = [0, 256], sizes = [8, 128], strides = [1, 1]} : vector<8x384xf32> to vector<8x128xf32>
    %161 = arith.truncf %160 : vector<8x128xf32> to vector<8x128xbf16>
    %162 = arith.truncf %146 : vector<9x128xf32> to vector<9x128xbf16>
    %cst_47 = arith.constant dense<0.000000e+00> : vector<36x128xf32>
    %163 = tpu.matmul %18, %162, %cst_47 {dimension_numbers = #tpu.dot_dimension_numbers<[1], [0], [0], [1], [0, 0, 1, 1], [], []>} : vector<36x9xbf16>, vector<9x128xbf16>, vector<36x128xf32> -> vector<36x128xf32>
    %cst_48 = arith.constant 0.000000e+00 : f32
    %164 = vector.broadcast %cst_48 : f32 to vector<36x128xf32>
    %165 = arith.select %86, %163, %164 : vector<36x128xi1>, vector<36x128xf32>
    %166 = arith.truncf %165 : vector<36x128xf32> to vector<36x128xbf16>
    %167 = arith.truncf %157 : vector<8x128xf32> to vector<8x128xbf16>
    %cst_49 = arith.constant dense<0.000000e+00> : vector<32x128xf32>
    %168 = tpu.matmul %37, %167, %cst_49 {dimension_numbers = #tpu.dot_dimension_numbers<[1], [0], [0], [1], [0, 0, 1, 1], [], []>} : vector<32x8xbf16>, vector<8x128xbf16>, vector<32x128xf32> -> vector<32x128xf32>
    %cst_50 = arith.constant 0.000000e+00 : f32
    %169 = vector.broadcast %cst_50 : f32 to vector<32x128xf32>
    %170 = arith.select %135, %168, %169 : vector<32x128xi1>, vector<32x128xf32>
    %171 = arith.truncf %170 : vector<32x128xf32> to vector<32x128xbf16>
    %cst_51 = arith.constant dense<0.000000e+00> : vector<36x9xf32>
    %172 = tpu.matmul %166, %148, %cst_51 {dimension_numbers = #tpu.dot_dimension_numbers<[1], [1], [0], [0], [0, 0, 1, 0], [], []>} : vector<36x128xbf16>, vector<9x128xbf16>, vector<36x9xf32> -> vector<36x9xf32>
    %cst_52 = arith.constant dense<0xFF800000> : vector<36xf32>
    %173 = vector.multi_reduction <maximumf>, %172, %cst_52 [1] : vector<36x9xf32> to vector<36xf32>
    %174 = vector.shape_cast %173 : vector<36xf32> to vector<36x1xf32>
    %175 = vector.broadcast %174 : vector<36x1xf32> to vector<36x9xf32>
    %176 = arith.subf %172, %175 : vector<36x9xf32>
    %177 = math.exp %176 : vector<36x9xf32>
    %cst_53 = arith.constant dense<0.000000e+00> : vector<36xf32>
    %178 = vector.multi_reduction <add>, %177, %cst_53 [1] : vector<36x9xf32> to vector<36xf32>
    %179 = vector.shape_cast %178 : vector<36xf32> to vector<36x1xf32>
    %180 = vector.broadcast %179 : vector<36x1xf32> to vector<36x9xf32>
    %181 = arith.divf %177, %180 : vector<36x9xf32>
    %182 = arith.truncf %181 : vector<36x9xf32> to vector<36x9xbf16>
    %cst_54 = arith.constant dense<0.000000e+00> : vector<36x128xf32>
    %183 = tpu.matmul %182, %150, %cst_54 {dimension_numbers = #tpu.dot_dimension_numbers<[1], [0], [0], [1], [0, 0, 1, 1], [], []>} : vector<36x9xbf16>, vector<9x128xbf16>, vector<36x128xf32> -> vector<36x128xf32>
    %cst_55 = arith.constant 0.000000e+00 : f32
    %184 = vector.broadcast %cst_55 : f32 to vector<36x128xf32>
    %185 = arith.select %86, %183, %184 : vector<36x128xi1>, vector<36x128xf32>
    %cst_56 = arith.constant dense<0.000000e+00> : vector<32x8xf32>
    %186 = tpu.matmul %171, %159, %cst_56 {dimension_numbers = #tpu.dot_dimension_numbers<[1], [1], [0], [0], [0, 0, 1, 0], [], []>} : vector<32x128xbf16>, vector<8x128xbf16>, vector<32x8xf32> -> vector<32x8xf32>
    %cst_57 = arith.constant dense<0xFF800000> : vector<32xf32>
    %187 = vector.multi_reduction <maximumf>, %186, %cst_57 [1] : vector<32x8xf32> to vector<32xf32>
    %188 = vector.shape_cast %187 : vector<32xf32> to vector<32x1xf32>
    %189 = vector.broadcast %188 : vector<32x1xf32> to vector<32x8xf32>
    %190 = arith.subf %186, %189 : vector<32x8xf32>
    %191 = math.exp %190 : vector<32x8xf32>
    %cst_58 = arith.constant dense<0.000000e+00> : vector<32xf32>
    %192 = vector.multi_reduction <add>, %191, %cst_58 [1] : vector<32x8xf32> to vector<32xf32>
    %193 = vector.shape_cast %192 : vector<32xf32> to vector<32x1xf32>
    %194 = vector.broadcast %193 : vector<32x1xf32> to vector<32x8xf32>
    %195 = arith.divf %191, %194 : vector<32x8xf32>
    %196 = arith.truncf %195 : vector<32x8xf32> to vector<32x8xbf16>
    %cst_59 = arith.constant dense<0.000000e+00> : vector<32x128xf32>
    %197 = tpu.matmul %196, %161, %cst_59 {dimension_numbers = #tpu.dot_dimension_numbers<[1], [0], [0], [1], [0, 0, 1, 1], [], []>} : vector<32x8xbf16>, vector<8x128xbf16>, vector<32x128xf32> -> vector<32x128xf32>
    %cst_60 = arith.constant 0.000000e+00 : f32
    %198 = vector.broadcast %cst_60 : f32 to vector<32x128xf32>
    %199 = arith.select %135, %197, %198 : vector<32x128xi1>, vector<32x128xf32>
    %cst_61 = arith.constant dense<0.000000e+00> : vector<36x8xf32>
    %200 = tpu.matmul %166, %159, %cst_61 {dimension_numbers = #tpu.dot_dimension_numbers<[1], [1], [0], [0], [0, 0, 1, 0], [], []>} : vector<36x128xbf16>, vector<8x128xbf16>, vector<36x8xf32> -> vector<36x8xf32>
    %cst_62 = arith.constant dense<0xFF800000> : vector<36xf32>
    %201 = vector.multi_reduction <maximumf>, %200, %cst_62 [1] : vector<36x8xf32> to vector<36xf32>
    %202 = vector.shape_cast %201 : vector<36xf32> to vector<36x1xf32>
    %203 = vector.broadcast %202 : vector<36x1xf32> to vector<36x8xf32>
    %204 = arith.subf %200, %203 : vector<36x8xf32>
    %205 = math.exp %204 : vector<36x8xf32>
    %cst_63 = arith.constant dense<0.000000e+00> : vector<36xf32>
    %206 = vector.multi_reduction <add>, %205, %cst_63 [1] : vector<36x8xf32> to vector<36xf32>
    %207 = vector.shape_cast %206 : vector<36xf32> to vector<36x1xf32>
    %208 = vector.broadcast %207 : vector<36x1xf32> to vector<36x8xf32>
    %209 = arith.divf %205, %208 : vector<36x8xf32>
    %210 = arith.truncf %209 : vector<36x8xf32> to vector<36x8xbf16>
    %cst_64 = arith.constant dense<0.000000e+00> : vector<36x128xf32>
    %211 = tpu.matmul %210, %161, %cst_64 {dimension_numbers = #tpu.dot_dimension_numbers<[1], [0], [0], [1], [0, 0, 1, 1], [], []>} : vector<36x8xbf16>, vector<8x128xbf16>, vector<36x128xf32> -> vector<36x128xf32>
    %cst_65 = arith.constant 0.000000e+00 : f32
    %212 = vector.broadcast %cst_65 : f32 to vector<36x128xf32>
    %213 = arith.select %86, %211, %212 : vector<36x128xi1>, vector<36x128xf32>
    %cst_66 = arith.constant dense<0.000000e+00> : vector<32x9xf32>
    %214 = tpu.matmul %171, %148, %cst_66 {dimension_numbers = #tpu.dot_dimension_numbers<[1], [1], [0], [0], [0, 0, 1, 0], [], []>} : vector<32x128xbf16>, vector<9x128xbf16>, vector<32x9xf32> -> vector<32x9xf32>
    %cst_67 = arith.constant dense<0xFF800000> : vector<32xf32>
    %215 = vector.multi_reduction <maximumf>, %214, %cst_67 [1] : vector<32x9xf32> to vector<32xf32>
    %216 = vector.shape_cast %215 : vector<32xf32> to vector<32x1xf32>
    %217 = vector.broadcast %216 : vector<32x1xf32> to vector<32x9xf32>
    %218 = arith.subf %214, %217 : vector<32x9xf32>
    %219 = math.exp %218 : vector<32x9xf32>
    %cst_68 = arith.constant dense<0.000000e+00> : vector<32xf32>
    %220 = vector.multi_reduction <add>, %219, %cst_68 [1] : vector<32x9xf32> to vector<32xf32>
    %221 = vector.shape_cast %220 : vector<32xf32> to vector<32x1xf32>
    %222 = vector.broadcast %221 : vector<32x1xf32> to vector<32x9xf32>
    %223 = arith.divf %219, %222 : vector<32x9xf32>
    %224 = arith.truncf %223 : vector<32x9xf32> to vector<32x9xbf16>
    %cst_69 = arith.constant dense<0.000000e+00> : vector<32x128xf32>
    %225 = tpu.matmul %224, %150, %cst_69 {dimension_numbers = #tpu.dot_dimension_numbers<[1], [0], [0], [1], [0, 0, 1, 1], [], []>} : vector<32x9xbf16>, vector<9x128xbf16>, vector<32x128xf32> -> vector<32x128xf32>
    %cst_70 = arith.constant 0.000000e+00 : f32
    %226 = vector.broadcast %cst_70 : f32 to vector<32x128xf32>
    %227 = arith.select %135, %225, %226 : vector<32x128xi1>, vector<32x128xf32>
    %c0_71 = arith.constant 0 : index
    %c0_72 = arith.constant 0 : index
    %228 = vector.load %arg11[%c0_71, %c0_72] : memref<9x36xbf16, #tpu.memory_space<vmem>>, vector<9x36xbf16>
    %229 = arith.truncf %185 : vector<36x128xf32> to vector<36x128xbf16>
    %cst_73 = arith.constant dense<0.000000e+00> : vector<9x128xf32>
    %230 = tpu.matmul %228, %229, %cst_73 {dimension_numbers = #tpu.dot_dimension_numbers<[1], [0], [0], [1], [0, 0, 1, 1], [], []>} : vector<9x36xbf16>, vector<36x128xbf16>, vector<9x128xf32> -> vector<9x128xf32>
    %c0_74 = arith.constant 0 : index
    %c0_75 = arith.constant 0 : index
    %231 = vector.load %arg12[%c0_74, %c0_75] : memref<9x32xbf16, #tpu.memory_space<vmem>>, vector<9x32xbf16>
    %232 = arith.truncf %227 : vector<32x128xf32> to vector<32x128xbf16>
    %cst_76 = arith.constant dense<0.000000e+00> : vector<9x128xf32>
    %233 = tpu.matmul %231, %232, %cst_76 {dimension_numbers = #tpu.dot_dimension_numbers<[1], [0], [0], [1], [0, 0, 1, 1], [], []>} : vector<9x32xbf16>, vector<32x128xbf16>, vector<9x128xf32> -> vector<9x128xf32>
    %234 = arith.addf %230, %233 : vector<9x128xf32>
    %c0_77 = arith.constant 0 : index
    %c0_78 = arith.constant 0 : index
    %235 = vector.load %arg13[%c0_77, %c0_78] : memref<9x1xf32, #tpu.memory_space<vmem>>, vector<9x1xf32>
    %236 = vector.broadcast %235 : vector<9x1xf32> to vector<9x128xf32>
    %237 = arith.addf %234, %236 : vector<9x128xf32>
    %c0_79 = arith.constant 0 : index
    %c0_80 = arith.constant 0 : index
    %238 = vector.load %arg14[%c0_79, %c0_80] : memref<8x32xbf16, #tpu.memory_space<vmem>>, vector<8x32xbf16>
    %239 = arith.truncf %199 : vector<32x128xf32> to vector<32x128xbf16>
    %cst_81 = arith.constant dense<0.000000e+00> : vector<8x128xf32>
    %240 = tpu.matmul %238, %239, %cst_81 {dimension_numbers = #tpu.dot_dimension_numbers<[1], [0], [0], [1], [0, 0, 1, 1], [], []>} : vector<8x32xbf16>, vector<32x128xbf16>, vector<8x128xf32> -> vector<8x128xf32>
    %c0_82 = arith.constant 0 : index
    %c0_83 = arith.constant 0 : index
    %241 = vector.load %arg15[%c0_82, %c0_83] : memref<8x36xbf16, #tpu.memory_space<vmem>>, vector<8x36xbf16>
    %242 = arith.truncf %213 : vector<36x128xf32> to vector<36x128xbf16>
    %cst_84 = arith.constant dense<0.000000e+00> : vector<8x128xf32>
    %243 = tpu.matmul %241, %242, %cst_84 {dimension_numbers = #tpu.dot_dimension_numbers<[1], [0], [0], [1], [0, 0, 1, 1], [], []>} : vector<8x36xbf16>, vector<36x128xbf16>, vector<8x128xf32> -> vector<8x128xf32>
    %244 = arith.addf %240, %243 : vector<8x128xf32>
    %c0_85 = arith.constant 0 : index
    %c0_86 = arith.constant 0 : index
    %245 = vector.load %arg16[%c0_85, %c0_86] : memref<8x1xf32, #tpu.memory_space<vmem>>, vector<8x1xf32>
    %246 = vector.broadcast %245 : vector<8x1xf32> to vector<8x128xf32>
    %247 = arith.addf %244, %246 : vector<8x128xf32>
    %248 = arith.truncf %237 : vector<9x128xf32> to vector<9x128xbf16>
    %c0_87 = arith.constant 0 : index
    %c0_88 = arith.constant 0 : index
    %249 = vector.load %arg7[%c0_87, %c0_88] : memref<128x32xbf16, #tpu.memory_space<vmem>>, vector<128x32xbf16>
    %cst_89 = arith.constant dense<0.000000e+00> : vector<9x32xf32>
    %250 = tpu.matmul %248, %249, %cst_89 {dimension_numbers = #tpu.dot_dimension_numbers<[1], [0], [0], [1], [0, 0, 1, 1], [], []>} : vector<9x128xbf16>, vector<128x32xbf16>, vector<9x32xf32> -> vector<9x32xf32>
    %c0_90 = arith.constant 0 : index
    %c0_91 = arith.constant 0 : index
    %251 = vector.load %arg8[%c0_90, %c0_91] : memref<1x32xf32, #tpu.memory_space<vmem>>, vector<1x32xf32>
    %252 = vector.broadcast %251 : vector<1x32xf32> to vector<9x32xf32>
    %253 = arith.addf %250, %252 : vector<9x32xf32>
    %254 = arith.truncf %247 : vector<8x128xf32> to vector<8x128xbf16>
    %c0_92 = arith.constant 0 : index
    %c0_93 = arith.constant 0 : index
    %255 = vector.load %arg9[%c0_92, %c0_93] : memref<128x32xbf16, #tpu.memory_space<vmem>>, vector<128x32xbf16>
    %cst_94 = arith.constant dense<0.000000e+00> : vector<8x32xf32>
    %256 = tpu.matmul %254, %255, %cst_94 {dimension_numbers = #tpu.dot_dimension_numbers<[1], [0], [0], [1], [0, 0, 1, 1], [], []>} : vector<8x128xbf16>, vector<128x32xbf16>, vector<8x32xf32> -> vector<8x32xf32>
    %c0_95 = arith.constant 0 : index
    %c0_96 = arith.constant 0 : index
    %257 = vector.load %arg10[%c0_95, %c0_96] : memref<1x32xf32, #tpu.memory_space<vmem>>, vector<1x32xf32>
    %258 = vector.broadcast %257 : vector<1x32xf32> to vector<8x32xf32>
    %259 = arith.addf %256, %258 : vector<8x32xf32>
    %c0_97 = arith.constant 0 : index
    %c0_98 = arith.constant 0 : index
    %c0_99 = arith.constant 0 : index
    %260 = vector.load %arg17[%c0_97, %c0_98, %c0_99] : memref<1x9x32xf32, #tpu.memory_space<vmem>>, vector<1x9x32xf32>
    %261 = vector.shape_cast %260 : vector<1x9x32xf32> to vector<9x32xf32>
    %262 = vector.shape_cast %253 : vector<9x32xf32> to vector<1x9x32xf32>
    tpu.vector_store %arg17[%c0_97, %c0_98, %c0_99], %262 {strides = array<i32>} : memref<1x9x32xf32, #tpu.memory_space<vmem>>, vector<1x9x32xf32>,
    %c0_100 = arith.constant 0 : index
    %c0_101 = arith.constant 0 : index
    %c0_102 = arith.constant 0 : index
    %263 = vector.load %arg18[%c0_100, %c0_101, %c0_102] : memref<1x8x32xf32, #tpu.memory_space<vmem>>, vector<1x8x32xf32>
    %264 = vector.shape_cast %263 : vector<1x8x32xf32> to vector<8x32xf32>
    %265 = vector.shape_cast %259 : vector<8x32xf32> to vector<1x8x32xf32>
    tpu.vector_store %arg18[%c0_100, %c0_101, %c0_102], %265 {strides = array<i32>} : memref<1x8x32xf32, #tpu.memory_space<vmem>>, vector<1x8x32xf32>,
    %c0_103 = arith.constant 0 : index
    %c0_104 = arith.constant 0 : index
    %c0_105 = arith.constant 0 : index
    %266 = vector.load %arg19[%c0_103, %c0_104, %c0_105] : memref<1x36x9xf32, #tpu.memory_space<vmem>>, vector<1x36x9xf32>
    %267 = vector.shape_cast %266 : vector<1x36x9xf32> to vector<36x9xf32>
    %268 = vector.shape_cast %181 : vector<36x9xf32> to vector<1x36x9xf32>
    tpu.vector_store %arg19[%c0_103, %c0_104, %c0_105], %268 {strides = array<i32>} : memref<1x36x9xf32, #tpu.memory_space<vmem>>, vector<1x36x9xf32>,
    %c0_106 = arith.constant 0 : index
    %c0_107 = arith.constant 0 : index
    %c0_108 = arith.constant 0 : index
    %269 = vector.load %arg20[%c0_106, %c0_107, %c0_108] : memref<1x32x9xf32, #tpu.memory_space<vmem>>, vector<1x32x9xf32>
    %270 = vector.shape_cast %269 : vector<1x32x9xf32> to vector<32x9xf32>
    %271 = vector.shape_cast %223 : vector<32x9xf32> to vector<1x32x9xf32>
    tpu.vector_store %arg20[%c0_106, %c0_107, %c0_108], %271 {strides = array<i32>} : memref<1x32x9xf32, #tpu.memory_space<vmem>>, vector<1x32x9xf32>,
    return
  }
  func.func @transform_0(%arg0: i32) -> (i32, i32, i32) {
    %c0_i32 = arith.constant 0 : i32
    %c0_i32_0 = arith.constant 0 : i32
    %c0_i32_1 = arith.constant 0 : i32
    return %arg0, %c0_i32, %c0_i32_0 : i32, i32, i32
  }
  func.func @transform_1(%arg0: i32) -> (i32, i32, i32) {
    %c0_i32 = arith.constant 0 : i32
    %c0_i32_0 = arith.constant 0 : i32
    %c0_i32_1 = arith.constant 0 : i32
    return %arg0, %c0_i32, %c0_i32_0 : i32, i32, i32
  }
  func.func @transform_2(%arg0: i32) -> (i32, i32) {
    %c0_i32 = arith.constant 0 : i32
    %c0_i32_0 = arith.constant 0 : i32
    %c0_i32_1 = arith.constant 0 : i32
    return %c0_i32, %c0_i32_0 : i32, i32
  }
  func.func @transform_3(%arg0: i32) -> (i32, i32) {
    %c0_i32 = arith.constant 0 : i32
    %c0_i32_0 = arith.constant 0 : i32
    %c0_i32_1 = arith.constant 0 : i32
    return %c0_i32, %c0_i32_0 : i32, i32
  }
  func.func @transform_4(%arg0: i32) -> (i32, i32) {
    %c0_i32 = arith.constant 0 : i32
    %c0_i32_0 = arith.constant 0 : i32
    %c0_i32_1 = arith.constant 0 : i32
    return %c0_i32, %c0_i32_0 : i32, i32
  }
  func.func @transform_5(%arg0: i32) -> (i32, i32) {
    %c0_i32 = arith.constant 0 : i32
    %c0_i32_0 = arith.constant 0 : i32
    %c0_i32_1 = arith.constant 0 : i32
    return %c0_i32, %c0_i32_0 : i32, i32
  }
  func.func @transform_6(%arg0: i32) -> (i32, i32) {
    %c0_i32 = arith.constant 0 : i32
    %c0_i32_0 = arith.constant 0 : i32
    %c0_i32_1 = arith.constant 0 : i32
    return %c0_i32, %c0_i32_0 : i32, i32
  }
  func.func @transform_7(%arg0: i32) -> (i32, i32) {
    %c0_i32 = arith.constant 0 : i32
    %c0_i32_0 = arith.constant 0 : i32
    %c0_i32_1 = arith.constant 0 : i32
    return %c0_i32, %c0_i32_0 : i32, i32
  }
  func.func @transform_8(%arg0: i32) -> (i32, i32) {
    %c0_i32 = arith.constant 0 : i32
    %c0_i32_0 = arith.constant 0 : i32
    %c0_i32_1 = arith.constant 0 : i32
    return %c0_i32, %c0_i32_0 : i32, i32
  }
  func.func @transform_9(%arg0: i32) -> (i32, i32) {
    %c0_i32 = arith.constant 0 : i32
    %c0_i32_0 = arith.constant 0 : i32
    %c0_i32_1 = arith.constant 0 : i32
    return %c0_i32, %c0_i32_0 : i32, i32
  }
  func.func @transform_10(%arg0: i32) -> (i32, i32) {
    %c0_i32 = arith.constant 0 : i32
    %c0_i32_0 = arith.constant 0 : i32
    %c0_i32_1 = arith.constant 0 : i32
    return %c0_i32, %c0_i32_0 : i32, i32
  }
  func.func @transform_11(%arg0: i32) -> (i32, i32) {
    %c0_i32 = arith.constant 0 : i32
    %c0_i32_0 = arith.constant 0 : i32
    %c0_i32_1 = arith.constant 0 : i32
    return %c0_i32, %c0_i32_0 : i32, i32
  }
  func.func @transform_12(%arg0: i32) -> (i32, i32) {
    %c0_i32 = arith.constant 0 : i32
    %c0_i32_0 = arith.constant 0 : i32
    %c0_i32_1 = arith.constant 0 : i32
    return %c0_i32, %c0_i32_0 : i32, i32
  }
  func.func @transform_13(%arg0: i32) -> (i32, i32) {
    %c0_i32 = arith.constant 0 : i32
    %c0_i32_0 = arith.constant 0 : i32
    %c0_i32_1 = arith.constant 0 : i32
    return %c0_i32, %c0_i32_0 : i32, i32
  }
  func.func @transform_14(%arg0: i32) -> (i32, i32) {
    %c0_i32 = arith.constant 0 : i32
    %c0_i32_0 = arith.constant 0 : i32
    %c0_i32_1 = arith.constant 0 : i32
    return %c0_i32, %c0_i32_0 : i32, i32
  }
  func.func @transform_15(%arg0: i32) -> (i32, i32) {
    %c0_i32 = arith.constant 0 : i32
    %c0_i32_0 = arith.constant 0 : i32
    %c0_i32_1 = arith.constant 0 : i32
    return %c0_i32, %c0_i32_0 : i32, i32
  }
  func.func @transform_16(%arg0: i32) -> (i32, i32, i32) {
    %c0_i32 = arith.constant 0 : i32
    %c0_i32_0 = arith.constant 0 : i32
    %c0_i32_1 = arith.constant 0 : i32
    return %arg0, %c0_i32, %c0_i32_0 : i32, i32, i32
  }
  func.func @transform_17(%arg0: i32) -> (i32, i32, i32) {
    %c0_i32 = arith.constant 0 : i32
    %c0_i32_0 = arith.constant 0 : i32
    %c0_i32_1 = arith.constant 0 : i32
    return %arg0, %c0_i32, %c0_i32_0 : i32, i32, i32
  }
  func.func @transform_18(%arg0: i32) -> (i32, i32, i32) {
    %c0_i32 = arith.constant 0 : i32
    %c0_i32_0 = arith.constant 0 : i32
    %c0_i32_1 = arith.constant 0 : i32
    return %arg0, %c0_i32, %c0_i32_0 : i32, i32, i32
  }
  func.func @transform_19(%arg0: i32) -> (i32, i32, i32) {
    %c0_i32 = arith.constant 0 : i32
    %c0_i32_0 = arith.constant 0 : i32
    %c0_i32_1 = arith.constant 0 : i32
    return %arg0, %c0_i32, %c0_i32_0 : i32, i32, i32
  }
}

</mosaic_0001>

<bundles_post_ra>
// kernel: attention_forward.1
= control target key start
LH: loop header
LB: loop body
LE: loop exit
PB: predicated region body
PF: predicated region fallthrough
CT: control target
= control target key end

     0   :  { %s3838_s0 = inlined_call_operand.vmem [shape: f32[2,9,32], index: 0, kind: input, shape index: {}]   ;;  %s3839_s1 = inlined_call_operand.vmem [shape: f32[2,8,32], index: 1, kind: input, shape index: {}]   ;;  %s3840_s2 = inlined_call_operand.vmem [shape: bf16[32,384], index: 2, kind: input, shape index: {}]   ;;  %s3841_s3 = inlined_call_operand.vmem [shape: f32[1,384], index: 3, kind: input, shape index: {}]   ;;  %s3842_s4 = inlined_call_operand.vmem [shape: bf16[32,384], index: 4, kind: input, shape index: {}]   ;;  %s3843_s5 = inlined_call_operand.vmem [shape: f32[1,384], index: 5, kind: input, shape index: {}]   ;;  %s3844_s6 = inlined_call_operand.vmem [shape: bf16[128,32], index: 6, kind: input, shape index: {}]   ;;  %s3845_s7 = inlined_call_operand.vmem [shape: f32[1,32], index: 7, kind: input, shape index: {}]   ;;  %s3846_s8 = inlined_call_operand.vmem [shape: bf16[128,32], index: 8, kind: input, shape index: {}]   ;;  %s3847_s9 = inlined_call_operand.vmem [shape: f32[1,32], index: 9, kind: input, shape index: {}]   ;;  %s3848_s10 = inlined_call_operand.vmem [shape: bf16[9,36], index: 10, kind: input, shape index: {}]   ;;  %s3849_s11 = inlined_call_operand.vmem [shape: bf16[9,32], index: 11, kind: input, shape index: {}]   ;;  %s3850_s12 = inlined_call_operand.vmem [shape: f32[9,1], index: 12, kind: input, shape index: {}]   ;;  %s3851_s13 = inlined_call_operand.vmem [shape: bf16[8,32], index: 13, kind: input, shape index: {}]   ;;  %s3852_s14 = inlined_call_operand.vmem [shape: bf16[8,36], index: 14, kind: input, shape index: {}]   ;;  %s3853_s15 = inlined_call_operand.vmem [shape: f32[8,1], index: 15, kind: input, shape index: {}]   ;;  %s3854_s16 = inlined_call_operand.vmem [shape: f32[2,9,32], index: 16, kind: output, shape index: {0}]   ;;  %s3855_s17 = inlined_call_operand.hbm [shape: f32[2,8,32], index: 17, kind: output, shape index: {1}]   ;;  %s3856_s18 = inlined_call_operand.vmem [shape: f32[2,36,9], index: 18, kind: output, shape index: {2}]   ;;  %s3857_s19 = inlined_call_operand.hbm [shape: f32[2,32,9], index: 19, kind: output, shape index: {3}]  }
   0x1   :  { %3875 = sst [smem:[#allocation14_spill]] %s3838_s0 }
   0x2   :  { %3876 = sst [smem:[#allocation15_spill]] %s3839_s1 }
   0x3   :  { %3877 = sst [smem:[#allocation16_spill]] %s3840_s2 }
   0x4   :  { %3878 = sst [smem:[#allocation17_spill]] %s3841_s3 }
   0x5   :  { %3879 = sst [smem:[#allocation18_spill]] %s3842_s4 }
   0x6   :  { %3880 = sst [smem:[#allocation19_spill]] %s3843_s5 }
   0x7   :  { %3881 = sst [smem:[#allocation20_spill]] %s3844_s6 }
   0x8   :  { %3882 = sst [smem:[#allocation21_spill]] %s3847_s9 }
   0x9   :  { %3883 = sst [smem:[#allocation22_spill]] %s3855_s17 }
   0xa   :  { %25 = vsyncpa [#allocation3], 0 }
   0xb   :  { %27 = vsyncpa [#allocation3 + $0x1], 0 }
   0xc   :  { %28 = vsyncpa [#allocation5], 0 }
   0xd   :  { %30 = vsyncpa [#allocation5 + $0x1], 0  ;;  %s2950_s0 = smov 0   ;;  %s2952_s30 = smov 0  }
   0xe   :  { %s2954_s20 = smov 0   ;;  %s2956_s21 = smov 0  }
   0xf LB: > { %3884 = sst [smem:[#allocation8_spill]] %s2831_s0  ;;  %s2971_s1 = sadd.s32 4294967295, %s2843_s21   ;;  %s2843_s21 = sphi %s2956_s21, %s3999_s21   ;;  %s2839_s20 = sphi %s2954_s20, %s4001_s20   ;;  %s2835_s30 = sphi %s2952_s30, %s4003_s30   ;;  %s2831_s0 = sphi %s2950_s0, %s4002_s0  }
  0x10   : > { %3885 = sst [smem:[#allocation9_spill]] %s2839_s20  ;;  %s2371_s22 = sadd.s32 4294967294, %s2843_s21  }
  0x11   : > { %3886 = sst [smem:[#allocation10_spill]] %s2843_s21  ;;  %s2975_s2 = sadd.s32 1, %s2843_s21  }
  0x12   : > { %3887 = sst [smem:[#allocation11_spill]] %s2975_s2  ;;  %s415_s23 = sadd.s32 1, %s2839_s20 }
  0x13   : > { %s412_s24 = ssub.s32 %s2843_s21, %s2975_s2  ;;  %p425_p0 = scmp.ne.s32.totalorder %s2839_s20, %s2835_s30 }
  0x14   : > { %p413_p1 = scmp.eq.s32.totalorder %s412_s24, 0  ;;  %p426_p2 = scmp.eq.s32.totalorder %s2971_s1, 1 }
  0x15   : > { %p431_p3 = scmp.ne.s32.totalorder %s2835_s30, %s2831_s0  ;;  %p432_p4 = scmp.eq.s32.totalorder %s2371_s22, 1 }
  0x16   : > { %s2986_s25 = scalar_select %p413_p1, %s2839_s20, %s415_s23  }
  0x17   : > { %p2988_p5 = por %p426_p2, %p425_p0  ;;  %p2992_p6 = por %p432_p4, %p431_p3 }
  0x18   : > { %3888 = sst [smem:[#allocation12_spill]] %s2986_s25  ;;  %p2374_p7 = scmp.ge.s32.totalorder %s2843_s21, 1 }
  0x19   : > { %s3890_s26 = scalar_select %p2992_p6, 1, 0 }
  0x1a   : > { %p559_p8 = scmp.lt.s32.totalorder %s2843_s21, 3 }
  0x1b   : > { %3891 = sst [smem:[#allocation13_spill]] %s3890_s26 }
  0x1c   : > { %p560_p9 = pnand %p2374_p7, %p559_p8 }
  0x1d   : > { %s3892_s29 = sld [smem:[#allocation16_spill]] (!%p560_p9)  ;;  %p634_p10 = scmp.lt.s32.totalorder (!%p560_p9), %s2971_s1, 1 }
  0x1e   : > { %563 = sbr.rel (%p560_p9) target bundleno = 1291 (0x50b), region = 84  ;;  %s3893_s4 = sld [smem:[#allocation18_spill]] (!%p560_p9) }
  0x1f   : > { %s3894_s24 = sld [smem:[#allocation14_spill]] (!%p560_p9)  ;;  %s3603_s23 = sand.u32 (!%p560_p9), 1, %s2835_s30  }
  0x20   : > { %s3895_s26 = sld [smem:[#allocation15_spill]] (!%p560_p9)  ;;  %s2376_s25 = sshll.u32 (!%p560_p9), %s3603_s23, 5 }
  0x21   : > { %s3896_s5 = sld [smem:[#allocation19_spill]] (!%p560_p9) }
  0x22   : > { %s3990_s6 = sld [smem:[#allocation20_spill]] (!%p560_p9) }
  0x23   : > { %v2397_v0 = vld [vmem:[%s3892_s29 + $0x18] sm:$0xf]  ;;  %v2595_v1 = vld [vmem:[%s3892_s29 + $0x20] sm:$0xf0]  ;;  %v2385_v5 = vld [vmem:[%s3892_s29] sm:$0xf]  ;;  %v654_v41 = vlaneseq }
  0x24   : > { %v2424_v2 = vld [vmem:[%s3893_s4 + $0x18] sm:$0xf]  ;;  %v2398_v3 = vor.u32 %v2595_v1, %v2397_v0  ;;  %v2601_v4 = vld [vmem:[%s3893_s4 + $0x20] sm:$0xf0]  ;;  %v2592_v6 = vld [vmem:[%s3892_s29 + $0x8] sm:$0xf0] }
  0x25   : > { %v2425_v7 = vor.u32 %v2601_v4, %v2424_v2  ;;  %v2412_v8 = vld [vmem:[%s3893_s4] sm:$0xf]  ;;  %v2598_v9 = vld [vmem:[%s3893_s4 + $0x8] sm:$0xf0]  ;;  %v2386_v10 = vor.u32 %v2592_v6, %v2385_v5  ;;  %v2594_v11 = vld [vmem:[%s3892_s29 + $0x1c] sm:$0xf] }
  0x26   : > { %982 = vmatpush.bf16.msra.mxu1 %v2398_v3  ;;  %v2399_v12 = vld [vmem:[%s3892_s29 + $0x24] sm:$0xf0]  ;;  %v2405_v13 = vld [vmem:[%s3892_s29 + $0x20] sm:$0xf]  ;;  %v2413_v14 = vor.u32 %v2598_v9, %v2412_v8  ;;  %s3033_s22 = scalar_select %p634_p10, %s2971_s1, 1  ;;  %vm3866_vm0 = vcmask 261120  }
  0x27   : > { %1078 = vmatpush.bf16.msra.mxu3 %v2425_v7  ;;  %v2402_v15 = vor.u32 %v2594_v11, %v2399_v12  ;;  %v2596_v16 = vld [vmem:[%s3892_s29 + $0x28] sm:$0xf0]  ;;  %v2591_v17 = vld [vmem:[%s3892_s29 + $0x4] sm:$0xf]  ;;  %v2387_v19 = vld [vmem:[%s3892_s29 + $0xc] sm:$0xf0] }
  0x28   : > { %v2406_v18 = vor.u32 %v2596_v16, %v2405_v13  ;;  %v2393_v20 = vld [vmem:[%s3892_s29 + $0x8] sm:$0xf]  ;;  %v2593_v21 = vld [vmem:[%s3892_s29 + $0x10] sm:$0xf0]  ;;  %s3874_s9 = sshll.u32 %s3033_s22, 4  ;;  %s2379_s17 = sshll.u32 %s3033_s22, 3  ;;  %v2390_v25 = vor.u32 %v2591_v17, %v2387_v19 }
  0x29   : > { %s638_s20 = scalar_lea.vmem %s3894_s24, %s3874_s9  ;;  %v2394_v22 = vor.u32 %v2593_v21, %v2393_v20  ;;  %s642_s27 = scalar_lea.vmem %s3895_s26, %s2379_s17  ;;  %v2432_v29 = vld [vmem:[%s3893_s4 + $0x20] sm:$0xf]  ;;  %v2602_v30 = vld [vmem:[%s3893_s4 + $0x28] sm:$0xf0]  ;;  %v2420_v32 = vld [vmem:[%s3893_s4 + $0x8] sm:$0xf] }
  0x2a   : > { %983 = vmatpush.bf16.msra.mxu1 %v2386_v10  ;;  %1010 = vmatpush.bf16.msra.mxu2 %v2406_v18  ;;  %v920_v23 = vld [vmem:[%s638_s20] sm:$0xff]  ;;  %v921_v24 = vld [vmem:[%s638_s20 + $0x8] sm:$0x1]  ;;  %v2433_v31 = vor.u32 %v2602_v30, %v2432_v29  ;;  %v2599_v33 = vld [vmem:[%s3893_s4 + $0x10] sm:$0xf0]  ;;  %v3090_v42 = vshrl.u32 %v654_v41, 7 }
  0x2b   : > { %1079 = vmatpush.bf16.msra.mxu3 %v2413_v14  ;;  %v923_v26 = vpack.c.bf16 %v921_v24, %v920_v23  ;;  %v922_v27 = vld [vmem:[%s642_s27] sm:$0xff]  ;;  %v2421_v34 = vor.u32 %v2599_v33, %v2420_v32  ;;  %v2600_v35 = vld [vmem:[%s3893_s4 + $0x1c] sm:$0xf]  ;;  %v2426_v36 = vld [vmem:[%s3893_s4 + $0x24] sm:$0xf0]  ;;  %v3092_v43 = vand.u32 127, %v654_v41 }
  0x2c   : > { %v1020_v28 = vpack.c.bf16 %v922_v27, %v922_v27  ;;  %v2429_v37 = vor.u32 %v2600_v35, %v2426_v36  ;;  %v2597_v38 = vld [vmem:[%s3893_s4 + $0x4] sm:$0xf]  ;;  %v2414_v39 = vld [vmem:[%s3893_s4 + $0xc] sm:$0xf0]  ;;  %v3095_v44 = vadd.s32 8, %v3090_v42  ;;  %s3897_s26 = sld [smem:[#allocation17_spill]] }
  0x2d   : > { %2407 = vmatmul.msk.bf16.vlgmr.msra.gmra.mxu1 %vm3866_vm0, %v923_v26  ;;  %v2417_v40 = vor.u32 %v2597_v38, %v2414_v39  ;;  %v708_v45 = vadd.s32 8, %v3092_v43  ;;  %v3101_v47 = vld [vmem:[%s3896_s5] sm:$0x7]  ;;  %v3104_v48 = vadd.s32 9, %v3092_v43  ;;  %vm3867_vm3 = vcmask 1043456   ;;  %s2622_s27 = smul.u32 40, %s3033_s22 }
  0x2e   : > { %996 = vmatpush.bf16.msrb.mxu1 %v2402_v15  ;;  %1011 = vmatpush.bf16.msra.mxu2 %v2394_v22  ;;  %vm663_vm1 = vcmp.eq.s32.totalorder %v3095_v44, %v3092_v43  ;;  %v1031_v50 = vperm.slane %v3101_v47, 0  ;;  %vm662_vm4 = vcmp.eq.s32.totalorder %v3090_v42, %v3092_v43  ;;  %vm1125_vm7 = vcmask 1044480   ;;  %s3631_s24 = scalar_lea.vmem [#allocation4], %s2376_s25  ;;  %s2179_s25 = scalar_lea.sflag [#allocation5], %s3603_s23 }
  0x2f   : > { %2434 = vmatmul.msk.bf16.vlgmr.msra.gmra.mxu3 %vm3866_vm0, %v1020_v28  ;;  %1091 = vmatpush.bf16.msra.mxu0 %v2429_v37  ;;  %vm710_vm2 = vcmp.eq.s32.totalorder %v3095_v44, %v708_v45  ;;  %vm669_vm5 = vcmp.eq.s32.totalorder %v3095_v44, %v3104_v48  ;;  %v2845_v53 = vmov 65535   ;;  %v3125_v55 = vadd.s32 16, %v3090_v42  ;;  %s3419_s17 = scalar_lea.vmem %s3856_s18, %s2622_s27  ;;  %s2621_s27 = sshll.u32 %s2971_s1, 5 }
  0x30   : > { %vm714_vm6 = vmor %vm663_vm1, %vm710_vm2  ;;  %v1126_v54 = vsel %vm3867_vm3, 4294967295, %v2845_v53  ;;  %v2846_v58 = vmov 0.0   ;;  %v3132_v62 = vadd.s32 24, %v3090_v42  ;;  %v717_v2 = vadd.s32 16, %v3092_v43  ;;  %v2603_v53 = vld [vmem:[%s3848_s10] sm:$0x10]  ;;  %s2210_s28 = scalar_lea.hbm %s3857_s19, %s2621_s27 }
  0x31   : > { %2409 = vmatmul.msk.bf16.vlgmr.msra.gmra.mxu2 %vm3866_vm0, %v923_v26  ;;  %v700_v59 = vsel %vm662_vm4, 1.0, %v2846_v58  ;;  %vm674_vm8 = vmor %vm663_vm1, %vm669_vm5  ;;  %v736_v63 = vsel %vm714_vm6, 1.0, %v2846_v58  ;;  %v1127_v1 = vsel %vm1125_vm7, %v1126_v54, 0  ;;  %vm664_vm9 = vcmp.eq.s32.totalorder %v3125_v55, %v3092_v43 }
  0x32   : > { %997 = vmatpush.bf16.msrb.mxu1 %v2390_v25  ;;  %v3109_v49 = vld [vmem:[%s3897_s26] sm:$0x7]  ;;  %v701_v4 = vsel %vm674_vm8, 1.0, %v2846_v58  ;;  %vm711_vm10 = vcmp.eq.s32.totalorder %v3125_v55, %v708_v45  ;;  %v739_v6 = vpack.c.bf16 %v736_v63, %v700_v59  ;;  %vm3868_vm11 = vcmask 64512   ;;  %s2211_s26 = sshll.u32 %s3631_s24, 4  ;;  %s2212_s26 = int_to_ptr.vmem [resolvable:$true] %s2211_s26 }
  0x33   : > { %1092 = vmatpush.bf16.msra.mxu0 %v2417_v40  ;;  %v934_v51 = vperm.slane %v3109_v49, 0  ;;  %vm665_vm12 = vcmp.eq.s32.totalorder %v3132_v62, %v3092_v43  ;;  %vm712_vm13 = vcmp.eq.s32.totalorder %v3132_v62, %v708_v45  ;;  %v705_v8 = vpack.c.bf16 %v701_v4, %v700_v59  ;;  %vm715_vm14 = vmor %vm664_vm9, %vm711_vm10 }
  0x34   : > { %vm720_vm15 = vcmp.eq.s32.totalorder %v3125_v55, %v717_v2  ;;  %v678_v9 = vadd.s32 18, %v3092_v43  ;;  %vm3869_vm1 = vcmask 72704   ;;  %v726_v11 = vadd.s32 24, %v3092_v43  ;;  %vm716_vm4 = vmor %vm665_vm12, %vm712_vm13 }
  0x35   : > { %vm671_vm2 = vcmp.eq.s32.totalorder %v3132_v62, %v3104_v48  ;;  %vm721_vm5 = vcmp.eq.s32.totalorder %v3132_v62, %v717_v2  ;;  %vm3157_vm6 = vmor %vm715_vm14, %vm720_vm15  ;;  %v3898_v12 = vmov 0  ;;  %vm670_vm7 = vcmp.eq.s32.totalorder %v3125_v55, %v3104_v48  ;;  %v2608_v2 = vld [vmem:[%s3990_s6 + $0x18] sm:$0xff] }
  0x36   : > { %1104 = vmatpush.bf16.msra.mxu1 %v2433_v31  ;;  %2435 = vmatmul.msk.bf16.vlgmr.msra.gmra.mxu0 %vm3866_vm0, %v1020_v28  ;;  %v3899_v12 = vsel %vm3157_vm6, 4294967295, %v3898_v12  ;;  %v689_v13 = vadd.s32 27, %v3092_v43  ;;  %vm676_vm8 = vmor %vm665_vm12, %vm671_vm2  ;;  %vm682_vm10 = vcmp.eq.s32.totalorder %v3132_v62, %v678_v9  ;;  %vm730_vm14 = vcmp.eq.s32.totalorder %v3132_v62, %v726_v11 }
  0x37   : > { %vm725_vm13 = vmor %vm716_vm4, %vm721_vm5  ;;  %v936_v15 = vperm.slane %v3109_v49, 2  ;;  %vm3900_vm2 = vnez %v3899_v12  ;;  %v3183_v22 = vadd.s32 32, %v3090_v42  ;;  %v935_v31 = vperm.slane %v3109_v49, 1 }
  0x38   : > { %vm675_vm15 = vmor %vm664_vm9, %vm670_vm7  ;;  %v737_v16 = vsel %vm3900_vm2, 1.0, %v2846_v58  ;;  %vm3901_vm9 = vcmask 64512   ;;  %v1033_v36 = vperm.slane %v3101_v47, 2  ;;  %v1032_v40 = vperm.slane %v3101_v47, 1 }
  0x39   : > { %vm683_vm4 = vcmp.eq.s32.totalorder %v3183_v22, %v678_v9 }
  0x3a   : > { %1105 = vmatpush.bf16.msra.mxu1 %v2421_v34 }
  0x3d   : > { %2408 = vmatmul.msk.bf16.vlgmr.msrb.gmra.mxu1 %vm3866_vm0, %v923_v26 }
  0x4d   : > { %2436 = vmatmul.msk.bf16.vlgmr.msra.gmra.mxu1 %vm3866_vm0, %v1020_v28  ;;  %vm681_vm0 = vcmp.eq.s32.totalorder %v3125_v55, %v678_v9 }
  0x4e   : > { %vm686_vm6 = vmor %vm675_vm15, %vm681_vm0  ;;  %vm666_vm0 = vcmp.eq.s32.totalorder %v3183_v22, %v3092_v43  ;;  %vm757_vm15 = vcmp.lt.s32.totalorder %v3092_v43, 8 }
  0x4f   : > { %v702_v20 = vsel %vm686_vm6, 1.0, %v2846_v58  ;;  %vm694_vm6 = vcmp.eq.s32.totalorder %v3183_v22, %v689_v13 }
  0xaa   : > { %v985_v46 = vpop.f32.mrf.mxu1 }
  0xab   : > { %v986_v60 = vadd.f32 %v985_v46, %v934_v51 }
  0xb2   : > { %v1081_v52 = vpop.f32.mrf.mxu3  ;;  %v987_v57 = vpop.f32.mrf.mxu1 }
  0xb3   : > { %v1082_v56 = vadd.f32 %v1081_v52, %v1031_v50  ;;  %v988_v61 = vadd.f32 %v987_v57, %v934_v51  ;;  %v1094_v42 = vpop.f32.mrf.mxu0  ;;  %v3909_v57 = vmov 0 }
  0xb4   : > { %v1013_v14 = vpop.f32.mrf.mxu2  ;;  %v1095_v45 = vadd.f32 %v1094_v42, %v1032_v40 }
  0xb5   : > { %v1162_v0 = vpack.c.bf16 %v1082_v56, %v1082_v56  ;;  %v1113_v3 = vpack.c.bf16 %v988_v61, %v986_v60  ;;  %v1014_v18 = vadd.f32 %v1013_v14, %v936_v15 }
  0xb7   : > { %v1171_v5 = vsel %vm3867_vm3, %v1162_v0, 0  ;;  %v1129_v7 = vand.u32 %v1127_v1, %v1113_v3  ;;  %vm687_vm3 = vmor %vm676_vm8, %vm682_vm10  ;;  %vm3904_vm10 = vcmask 1043456   ;;  %v2619_v0 = vld [vmem:[%s3846_s8 + $0x30] sm:$0xff] }
  0xb8   : > { %1180 = vmatpush.bf16.msrb.mxu3 %v1171_v5 }
  0xb9   : > { %1138 = vmatpush.bf16.msrb.mxu2 %v1129_v7 }
  0xba   : > { %v1083_v10 = vpop.f32.mrf.mxu3  ;;  %v999_v30 = vpop.f32.mrf.mxu1 }
  0xbb   : > { %2440 = vmatmul.msk.bf16.vlgmr.msrb.gmra.mxu3 %vm3868_vm11, %v739_v6  ;;  %vm693_vm11 = vcmp.eq.s32.totalorder %v3132_v62, %v689_v13  ;;  %v1000_v33 = vadd.f32 %v999_v30, %v935_v31  ;;  %v1096_v49 = vpop.f32.mrf.mxu0 }
  0xbc   : > { %2437 = vmatmul.msk.bf16.vlgmr.msrb.gmra.mxu2 %vm3869_vm1, %v705_v8  ;;  %vm734_vm1 = vmor %vm725_vm13, %vm730_vm14  ;;  %v1015_v19 = vpop.f32.mrf.mxu2  ;;  %vm779_vm13 = vcmp.ge.s32.totalorder %v3092_v43, 8  ;;  %vm780_vm14 = vcmp.lt.s32.totalorder %v3092_v43, 16 }
  0xbd   : > { %vm698_vm12 = vmor %vm687_vm3, %vm693_vm11  ;;  %v738_v17 = vsel %vm734_vm1, 1.0, %v2846_v58  ;;  %v1016_v23 = vadd.f32 %v1015_v19, %v936_v15  ;;  %vm672_vm3 = vcmp.eq.s32.totalorder %v3183_v22, %v3104_v48  ;;  %vm3902_vm11 = vcmask 72704  }
  0xbe   : > { %v703_v21 = vsel %vm698_vm12, 1.0, %v2846_v58  ;;  %v740_v24 = vpack.c.bf16 %v738_v17, %v737_v16  ;;  %vm677_vm1 = vmor %vm666_vm0, %vm672_vm3  ;;  %v1111_v48 = vpack.c.bf16 %v1095_v45, %v1095_v45  ;;  %vm747_vm12 = vcmp.lt.s32.totalorder %v3095_v44, 9 }
  0xbf   : > { %v1019_v25 = vpack.c.bf16 %v1016_v23, %v1014_v18  ;;  %v706_v26 = vpack.c.bf16 %v703_v21, %v702_v20  ;;  %vm688_vm5 = vmor %vm677_vm1, %vm683_vm4  ;;  %vm765_vm0 = vcmp.ge.s32.totalorder %v3095_v44, 9 }
  0xc0   : > { %vm699_vm7 = vmor %vm688_vm5, %vm694_vm6  ;;  %1392 = vmatpush.bf16.xpose.msra.mxu3 %v1111_v48  ;;  %vm807_vm5 = vcmp.ge.s32.totalorder %v3092_v43, 16  ;;  %vm808_vm6 = vcmp.lt.s32.totalorder %v3092_v43, 24 }
  0xc1   : > { %v1355_v27 = vand.u32 %v1127_v1, %v1019_v25  ;;  %v704_v28 = vsel %vm699_vm7, 1.0, %v2846_v58  ;;  %vm3903_vm8 = vmmov %vm3902_vm11  ;;  %vm835_vm7 = vcmp.ge.s32.totalorder %v3092_v43, 24 }
  0xc2   : > { %v707_v29 = vpack.c.bf16 %v704_v28, %v704_v28  ;;  %v1001_v32 = vpop.f32.mrf.mxu1  ;;  %vm3203_vm2 = vmand %vm779_vm13, %vm780_vm14  ;;  %vm794_vm14 = vcmp.ge.s32.totalorder %v3125_v55, 18 }
  0xc3   : > { %1364 = vmatpush.bf16.msrb.mxu1 %v1355_v27  ;;  %v1002_v34 = vadd.f32 %v1001_v32, %v935_v31  ;;  %vm760_vm3 = vmand %vm747_vm12, %vm757_vm15  ;;  %vm800_vm12 = vcmp.lt.s32.totalorder %v3132_v62, 27 }
  0xc4   : > { %vm3212_vm1 = vmpackc.low %vm3203_vm2, %vm757_vm15 }
  0xc5   : > { %v1018_v35 = vpack.c.bf16 %v1002_v34, %v1000_v33  ;;  %vm809_vm13 = vmand %vm807_vm5, %vm808_vm6 }
  0xc7   : > { %1205 = vmatpush.bf16.xpose.msrb.mxu0 %v1018_v35 }
  0xc8   : > { %1725 = vmatpush.bf16.xpose.msrb.mxu3 %v1018_v35 }
  0xca   : > { %v1107_v37 = vpop.f32.mrf.mxu1 }
  0xcb   : > { %2441 = vmatmul.msk.bf16.gmra.mxu3 %vm3901_vm9, %v740_v24  ;;  %v1108_v38 = vadd.f32 %v1107_v37, %v1033_v36  ;;  %vm783_vm9 = vmand %vm765_vm0, %vm3203_vm2 }
  0xcc   : > { %2438 = vmatmul.msk.bf16.gmra.mxu2 %vm3902_vm11, %v706_v26  ;;  %vm788_vm11 = vmor %vm760_vm3, %vm783_vm9  ;;  %vm823_vm3 = vcmp.ge.s32.totalorder %v3132_v62, 27 }
  0xcd   : > { %v1112_v39 = vpack.c.bf16 %v1108_v38, %v1108_v38  ;;  %vm3216_vm4 = vmpackc.low %vm788_vm11, %vm757_vm15 }
  0xce   : > { %v3910_v57 = vsel %vm3216_vm4, 4294967295, %v3909_v57  ;;  %vm812_vm9 = vmand %vm794_vm14, %vm809_vm13  ;;  %vm3920_vm14 = vcmask 72704  }
  0xcf   : > { %v1509_v41 = vsel %vm3904_vm10, %v1112_v39, 0  ;;  %1541 = vmatpush.bf16.xpose.msra.mxu0 %v1111_v48  ;;  %vm771_vm10 = vcmp.lt.s32.totalorder %v3125_v55, 18  ;;  %vm813_vm11 = vmand %vm800_vm12, %vm809_vm13  ;;  %v2495_v55 = vld [vmem:[%s3848_s10] sm:$0xf] }
  0xd0   : > { %1518 = vmatpush.bf16.msra.mxu2 %v1509_v41  ;;  %1697 = vmatpush.bf16.msra.mxu1 %v1509_v41  ;;  %vm784_vm0 = vmand %vm771_vm10, %vm3203_vm2 }
  0xd1   : > { %vm817_vm6 = vmor %vm784_vm0, %vm812_vm9 }
  0xd2   : > { %v1109_v46 = vpop.f32.mrf.mxu1  ;;  %vm3922_vm12 = vmmov %vm3920_vm14 }
  0xd4   : > { %1848 = vmatpush.bf16.msrb.mxu2 %v1355_v27 }
  0xdc   : > { %2439 = vmatmul.msk.bf16.gmra.mxu2 %vm3903_vm8, %v707_v29  ;;  %vm836_vm8 = vcmp.lt.s32.totalorder %v3092_v43, 32 }
  0xdd   : > { %vm3230_vm15 = vmand %vm835_vm7, %vm836_vm8  ;;  %vm829_vm8 = vcmp.lt.s32.totalorder %v3183_v22, 36 }
  0xde   : > { %vm841_vm5 = vmand %vm823_vm3, %vm3230_vm15 }
  0xdf   : > { %vm3242_vm7 = vmpackc.low %vm3230_vm15, %vm809_vm13  ;;  %vm3919_vm13 = vnez %v3910_v57  ;;  %v2607_v57 = vld [vmem:[%s3990_s6 + $0x10] sm:$0xff] }
  0xe0   : > { %vm3257_vm10 = vmand %vm829_vm8, %vm3230_vm15  ;;  %vm3921_vm15 = vcmask 64512  }
  0xe1   : > { %vm3923_vm0 = vmmov %vm3921_vm15 }
  0xe2   : > { %vm3924_vm3 = vmmov %vm3922_vm12 }
  0xe3   : > { %vm3925_vm9 = vmmov %vm3923_vm0 }
  0xe4   : > { %vm3928_vm8 = vmmov %vm3924_vm3 }
 0x13e   : > { %v1182_v50 = vpop.f32.mrf.mxu3 }
 0x13f   : > { %v1140_v51 = vpop.f32.mrf.mxu2 }
 0x146   : > { %v1184_v52 = vpop.f32.mrf.mxu3 }
 0x147   : > { %v2455_v54 = vpack.c.bf16 %v1184_v52, %v1182_v50  ;;  %v1142_v56 = vpop.f32.mrf.mxu2 }
 0x148   : > { %v2443_v44 = vpack.c.bf16 %v1142_v56, %v1140_v51 }
 0x149   : > { %2456 = vmatmul.msk.bf16.vlgmr.msra.gmra.mxu3 %vm3212_vm1, %v2455_v54 }
 0x14a   : > { %2444 = vmatmul.msk.bf16.vlgmr.msrb.gmra.mxu0 %vm3216_vm4, %v2443_v44  ;;  %vm846_vm4 = vmor %vm813_vm11, %vm841_vm5 }
 0x14b   : > { %vm3246_vm2 = vmpackc.low %vm846_vm4, %vm817_vm6  ;;  %vm3872_vm6 = vcmask 68608  }
 0x14c   : > { %vm2448_vm4 = vmpackc.low %vm3257_vm10, %vm3257_vm10 }
 0x14d   : > { %vm3926_vm11 = vmmov %vm3924_vm3 }
 0x14e   : > { %v1187_v58 = vpop.f32.mrf.mxu3  ;;  %vm3927_vm5 = vmmov %vm3923_vm0 }
 0x14f   : > { %v1145_v60 = vpop.f32.mrf.mxu2 }
 0x156   : > { %v1189_v43 = vpop.f32.mrf.mxu3 }
 0x157   : > { %v2458_v61 = vpack.c.bf16 %v1189_v43, %v1187_v58  ;;  %v1147_v63 = vpop.f32.mrf.mxu2 }
 0x158   : > { %v2446_v62 = vpack.c.bf16 %v1147_v63, %v1145_v60 }
 0x159   : > { %2459 = vmatmul.msk.bf16.gmra.mxu3 %vm3242_vm7, %v2458_v61 }
 0x15a   : > { %2447 = vmatmul.msk.bf16.gmra.mxu0 %vm3246_vm2, %v2446_v62 }
 0x15f   : > { %v1150_v1 = vpop.f32.mrf.mxu2 }
 0x160   : > { %v2449_v3 = vpack.c.bf16 %v1150_v1, %v1150_v1 }
 0x167   : > { %v1152_v4 = vpop.f32.mrf.mxu2 }
 0x169   : > { %2476 = vmatmul.msk.bf16.vlgmr.msrb.gmra.mxu3 %vm3212_vm1, %v2455_v54 }
 0x16a   : > { %2450 = vmatmul.msk.bf16.gmra.mxu0 %vm2448_vm4, %v2449_v3 }
 0x179   : > { %2479 = vmatmul.msk.bf16.gmra.mxu3 %vm3242_vm7, %v2458_v61 }
 0x17a   : > { %2464 = vmatmul.msk.bf16.vlgmr.msra.gmra.mxu0 %vm3919_vm13, %v2443_v44 }
 0x18a   : > { %2467 = vmatmul.msk.bf16.gmra.mxu0 %vm3246_vm2, %v2446_v62 }
 0x19a   : > { %2470 = vmatmul.msk.bf16.gmra.mxu0 %vm2448_vm4, %v2449_v3  ;;  %vm3929_vm4 = vmmov %vm3924_vm3 }
 0x1c7   : > { %v1207_v5 = vpop.f32.mrf.mxu0 }
 0x1c8   : > { %v1221_v6 = vsel %vm3920_vm14, %v1207_v5, -inf  ;;  %vm3930_vm14 = vmmov %vm3923_vm0 }
 0x1c9   : > { %1222 = vmax.xlane.f32.xlu0 %v1221_v6 }
 0x1cc   : > { %v1394_v7 = vpop.f32.mrf.mxu3 }
 0x1cd   : > { %v1404_v8 = vsel %vm3921_vm15, %v1394_v7, -inf  ;;  %vm3931_vm15 = vmmov %vm3924_vm3 }
 0x1ce   : > { %1405 = vmax.xlane.f32.xlu1 %v1404_v8 }
 0x1cf   : > { %v1209_v9 = vpop.f32.mrf.mxu0 }
 0x1d0   : > { %v1224_v10 = vsel %vm3922_vm12, %v1209_v9, -inf  ;;  %vm3932_vm12 = vmmov %vm3923_vm0 }
 0x1d1   : > { %1225 = vmax.xlane.f32.xlu0 %v1224_v10 }
 0x1d4   : > { %v1396_v11 = vpop.f32.mrf.mxu3 }
 0x1d5   : > { %v1407_v12 = vsel %vm3923_vm0, %v1396_v11, -inf  ;;  %vm3933_vm0 = vmmov %vm3924_vm3 }
 0x1d6   : > { %1408 = vmax.xlane.f32.xlu1 %v1407_v12 }
 0x1d7   : > { %v3276_v13 = vpop.f32.mrf.mxu0 }
 0x1d8   : > { %v1227_v14 = vsel %vm3924_vm3, %v3276_v13, -inf  ;;  %vm3934_vm3 = vmmov %vm3933_vm0 }
 0x1d9   : > { %1228 = vmax.xlane.f32.xlu2 %v1227_v14 }
 0x1dc   : > { %v3280_v15 = vpop.f32.mrf.mxu3 }
 0x1dd   : > { %v1410_v16 = vsel %vm3925_vm9, %v3280_v15, -inf  ;;  %vm3935_vm9 = vmmov %vm3927_vm5 }
 0x1de   : > { %1411 = vmax.xlane.f32.xlu0 %v1410_v16 }
 0x1df   : > { %v3284_v17 = vpop.f32.mrf.mxu0 }
 0x1e0   : > { %v1230_v18 = vsel %vm3926_vm11, %v3284_v17, -inf  ;;  %vm3936_vm11 = vmmov %vm3933_vm0 }
 0x1e1   : > { %1231 = vmax.xlane.f32.xlu2 %v1230_v18 }
 0x1e4   : > { %v3288_v19 = vpop.f32.mrf.mxu3 }
 0x1e5   : > { %v1413_v20 = vsel %vm3927_vm5, %v3288_v19, -inf }
 0x1e6   : > { %1414 = vmax.xlane.f32.xlu1 %v1413_v20 }
 0x1e7   : > { %v3292_v21 = vpop.f32.mrf.mxu0 }
 0x1e8   : > { %v1234_v22 = vsel %vm3872_vm6, %v3292_v21, -inf }
 0x1e9   : > { %1235 = vmax.xlane.f32.xlu2 %v1234_v22 }
 0x1ec   : > { %v3296_v23 = vpop.f32.mrf.mxu3 }
 0x1ed   : > { %v1737_v24 = vsel %vm3928_vm8, %v3296_v23, -inf  ;;  %vm3937_vm8 = vmmov %vm3927_vm5 }
 0x1ee   : > { %1738 = vmax.xlane.f32.xlu0 %v1737_v24 }
 0x1ef   : > { %v1219_v25 = vpop.f32.mrf.mxu0 }
 0x1f4   : > { %v3300_v26 = vpop.f32.mrf.mxu3 }
 0x1f5   : > { %v1740_v27 = vsel %vm3929_vm4, %v3300_v26, -inf  ;;  %vm3938_vm4 = vmmov %vm3927_vm5 }
 0x1f6   : > { %1741 = vmax.xlane.f32.xlu1 %v1740_v27 }
 0x1f7   : > { %v3304_v28 = vpop.f32.mrf.mxu0 }
 0x1f8   : > { %v1557_v29 = vsel %vm3930_vm14, %v3304_v28, -inf  ;;  %vm3939_vm14 = vmmov %vm3933_vm0 }
 0x1f9   : > { %1558 = vmax.xlane.f32.xlu2 %v1557_v29 }
 0x1fc   : > { %v3308_v30 = vpop.f32.mrf.mxu3 }
 0x1fd   : > { %v1743_v31 = vsel %vm3931_vm15, %v3308_v30, -inf  ;;  %vm3940_vm15 = vmmov %vm3938_vm4 }
 0x1fe   : > { %1744 = vmax.xlane.f32.xlu1 %v1743_v31 }
 0x1ff   : > { %v3312_v32 = vpop.f32.mrf.mxu0 }
 0x200   : > { %v1560_v33 = vsel %vm3932_vm12, %v3312_v32, -inf  ;;  %vm3941_vm12 = vmmov %vm3933_vm0 }
 0x201   : > { %1561 = vmax.xlane.f32.xlu0 %v1560_v33 }
 0x204   : > { %v3316_v34 = vpop.f32.mrf.mxu3 }
 0x205   : > { %v1746_v35 = vsel %vm3933_vm0, %v3316_v34, -inf  ;;  %vm3942_vm0 = vmmov %vm3938_vm4 }
 0x206   : > { %1747 = vmax.xlane.f32.xlu2 %v1746_v35 }
 0x207   : > { %v3320_v36 = vpop.f32.mrf.mxu0 }
 0x208   : > { %v1563_v12 = vsel %vm3938_vm4, %v3320_v36, -inf  ;;  %vm3947_vm4 = vmmov %vm3942_vm0 }
 0x20f   : > { %v3322_v37 = vpop.f32.mrf.mxu0 }
 0x210   : > { %v1566_v8 = vsel %vm3937_vm8, %v3322_v37, -inf }
 0x217   : > { %v3324_v38 = vpop.f32.mrf.mxu0 }
 0x21f   : > { %v1555_v39 = vpop.f32.mrf.mxu0 }
 0x23c   : > { %v1223_v40 = vpop.xlane.xlu0 %1222 }
 0x23d   : > { %v1237_v41 = vsub.f32 %v1207_v5, %v1223_v40 }
 0x23f   : > { %v1242_v42 = vmul.f32 1.442695, %v1237_v41 }
 0x241   : > { %v1406_v45 = vpop.xlane.xlu1 %1405  ;;  %2677 = vpow2.f32 %v1242_v42 }
 0x242   : > { %v1416_v46 = vsub.f32 %v1394_v7, %v1406_v45 }
 0x244   : > { %v1420_v48 = vmul.f32 1.442695, %v1416_v46  ;;  %v1226_v49 = vpop.xlane.xlu0 %1225 }
 0x245   : > { %v1238_v50 = vsub.f32 %v1209_v9, %v1226_v49 }
 0x246   : > { %2679 = vpow2.f32 %v1420_v48 }
 0x247   : > { %v3326_v47 = vpop.eup %2677  ;;  %v1244_v51 = vmul.f32 1.442695, %v1238_v50 }
 0x248   : > { %v1252_v54 = vsel %vm3934_vm3, %v3326_v47, 0.0  ;;  %vm3873_vm3 = vcmask 60416  }
 0x249   : > { %v1409_v52 = vpop.xlane.xlu1 %1408  ;;  %2681 = vpow2.f32 %v1244_v51  ;;  %1253 = vadd.xlane.f32.xlu0 %v1252_v54  ;;  %v1570_v41 = vsel %vm3873_vm3, %v3324_v38, -inf }
 0x24a   : > { %v1417_v56 = vsub.f32 %v1396_v11, %v1409_v52 }
 0x24c   : > { %v3330_v44 = vpop.eup %2679  ;;  %v1422_v58 = vmul.f32 1.442695, %v1417_v56  ;;  %v1229_v59 = vpop.xlane.xlu2 %1228 }
 0x24d   : > { %v1428_v60 = vsel %vm3935_vm9, %v3330_v44, 0.0  ;;  %v1239_v43 = vsub.f32 %v3276_v13, %v1229_v59  ;;  %vm3943_vm9 = vmmov %vm3936_vm11 }
 0x24e   : > { %2683 = vpow2.f32 %v1422_v58  ;;  %1429 = vadd.xlane.f32.xlu2 %v1428_v60  ;;  %vm3946_vm8 = vmmov %vm3943_vm9 }
 0x24f   : > { %v3335_v61 = vpop.eup %2681  ;;  %v1246_v63 = vmul.f32 1.442695, %v1239_v43 }
 0x250   : > { %v1255_v1 = vsel %vm3936_vm11, %v3335_v61, 0.0  ;;  %vm3944_vm11 = vmmov %vm3943_vm9 }
 0x251   : > { %v1412_v62 = vpop.xlane.xlu0 %1411  ;;  %1256 = vadd.xlane.f32.xlu1 %v1255_v1  ;;  %2685 = vpow2.f32 %v1246_v63 }
 0x252   : > { %v1418_v3 = vsub.f32 %v3280_v15, %v1412_v62 }
 0x254   : > { %v3340_v4 = vpop.eup %2683  ;;  %v1424_v5 = vmul.f32 1.442695, %v1418_v3  ;;  %v1232_v6 = vpop.xlane.xlu2 %1231 }
 0x255   : > { %v1431_v7 = vsel %vm3927_vm5, %v3340_v4, 0.0  ;;  %v1240_v9 = vsub.f32 %v3284_v17, %v1232_v6  ;;  %vm3945_vm5 = vmmov %vm3942_vm0 }
 0x256   : > { %2687 = vpow2.f32 %v1424_v5  ;;  %1432 = vadd.xlane.f32.xlu0 %v1431_v7  ;;  %1567 = vmax.xlane.f32.xlu2 %v1566_v8 }
 0x257   : > { %v1248_v10 = vmul.f32 1.442695, %v1240_v9  ;;  %v3349_v13 = vpop.eup %2685 }
 0x258   : > { %v1258_v17 = vsel %vm3939_vm14, %v3349_v13, 0.0  ;;  %vm3948_vm14 = vmmov %vm3946_vm8 }
 0x259   : > { %v1415_v11 = vpop.xlane.xlu1 %1414  ;;  %2689 = vpow2.f32 %v1248_v10  ;;  %1564 = vmax.xlane.f32.xlu1 %v1563_v12 }
 0x25a   : > { %v1419_v14 = vsub.f32 %v3288_v19, %v1415_v11 }
 0x25c   : > { %v3352_v15 = vpop.eup %2687  ;;  %v1426_v16 = vmul.f32 1.442695, %v1419_v14  ;;  %v1236_v18 = vpop.xlane.xlu2 %1235 }
 0x25d   : > { %v1434_v20 = vsel %vm3940_vm15, %v3352_v15, 0.0  ;;  %v1241_v22 = vsub.f32 %v3292_v21, %v1236_v18 }
 0x25e   : > { %2691 = vpow2.f32 %v1426_v16  ;;  %1259 = vadd.xlane.f32.xlu0 %v1258_v17  ;;  %1435 = vadd.xlane.f32.xlu2 %v1434_v20 }
 0x25f   : > { %v3359_v24 = vpop.eup %2689  ;;  %v1250_v25 = vmul.f32 1.442695, %v1241_v22 }
 0x260   : > { %v1261_v27 = vsel %vm3941_vm12, %v3359_v24, 0.0 }
 0x261   : > { %v1739_v19 = vpop.xlane.xlu0 %1738  ;;  %2693 = vpow2.f32 %v1250_v25  ;;  %1262 = vadd.xlane.f32.xlu1 %v1261_v27 }
 0x262   : > { %v1749_v29 = vsub.f32 %v3296_v23, %v1739_v19 }
 0x264   : > { %v3364_v31 = vpop.eup %2691  ;;  %v1753_v33 = vmul.f32 1.442695, %v1749_v29 }
 0x265   : > { %v1437_v35 = vsel %vm3942_vm0, %v3364_v31, 0.0 }
 0x266   : > { %2695 = vpow2.f32 %v1753_v33  ;;  %1438 = vadd.xlane.f32.xlu0 %v1437_v35 }
 0x267   : > { %v3368_v21 = vpop.eup %2693 }
 0x268   : > { %v1264_v40 = vsel %vm3872_vm6, %v3368_v21, 0.0 }
 0x269   : > { %v1742_v39 = vpop.xlane.xlu1 %1741  ;;  %1265 = vadd.xlane.f32.xlu2 %v1264_v40  ;;  %1571 = vmax.xlane.f32.xlu1 %v1570_v41 }
 0x26a   : > { %v1750_v23 = vsub.f32 %v3300_v26, %v1742_v39 }
 0x26c   : > { %v3375_v42 = vpop.eup %2695  ;;  %v1755_v45 = vmul.f32 1.442695, %v1750_v23  ;;  %v1559_v46 = vpop.xlane.xlu2 %1558 }
 0x26d   : > { %v1761_v48 = vsel %vm3943_vm9, %v3375_v42, 0.0  ;;  %v1573_v49 = vsub.f32 %v3304_v28, %v1559_v46 }
 0x26e   : > { %2697 = vpow2.f32 %v1755_v45  ;;  %1762 = vadd.xlane.f32.xlu0 %v1761_v48 }
 0x26f   : > { %v1578_v50 = vmul.f32 1.442695, %v1573_v49 }
 0x271   : > { %v1745_v51 = vpop.xlane.xlu1 %1744  ;;  %2699 = vpow2.f32 %v1578_v50 }
 0x272   : > { %v1751_v52 = vsub.f32 %v3308_v30, %v1745_v51 }
 0x274   : > { %v3381_v54 = vpop.eup %2697  ;;  %v1757_v26 = vmul.f32 1.442695, %v1751_v52  ;;  %v1562_v56 = vpop.xlane.xlu0 %1561 }
 0x275   : > { %v1764_v58 = vsel %vm3944_vm11, %v3381_v54, 0.0  ;;  %v1574_v59 = vsub.f32 %v3312_v32, %v1562_v56 }
 0x276   : > { %2701 = vpow2.f32 %v1757_v26  ;;  %1765 = vadd.xlane.f32.xlu1 %v1764_v58 }
 0x277   : > { %v3386_v60 = vpop.eup %2699  ;;  %v1580_v28 = vmul.f32 1.442695, %v1574_v59 }
 0x278   : > { %v1588_v63 = vsel %vm3945_vm5, %v3386_v60, 0.0 }
 0x279   : > { %v1748_v43 = vpop.xlane.xlu2 %1747  ;;  %2703 = vpow2.f32 %v1580_v28  ;;  %1589 = vadd.xlane.f32.xlu2 %v1588_v63 }
 0x27a   : > { %v1752_v30 = vsub.f32 %v3316_v34, %v1748_v43 }
 0x27c   : > { %v3391_v62 = vpop.eup %2701  ;;  %v1759_v1 = vmul.f32 1.442695, %v1752_v30 }
 0x27d   : > { %v1767_v3 = vsel %vm3946_vm8, %v3391_v62, 0.0 }
 0x27e   : > { %2705 = vpow2.f32 %v1759_v1  ;;  %1768 = vadd.xlane.f32.xlu1 %v1767_v3 }
 0x27f   : > { %v3395_v32 = vpop.eup %2703 }
 0x280   : > { %v1591_v5 = vsel %vm3947_vm4, %v3395_v32, 0.0 }
 0x281   : > { %1592 = vadd.xlane.f32.xlu0 %v1591_v5 }
 0x284   : > { %v3399_v6 = vpop.eup %2705 }
 0x285   : > { %v1770_v34 = vsel %vm3948_vm14, %v3399_v6, 0.0 }
 0x286   : > { %1771 = vadd.xlane.f32.xlu2 %v1770_v34 }
 0x2bc   : > { %v1254_v7 = vpop.xlane.xlu0 %1253 }
 0x2bd   : > { %2707 = vrcp.f32 %v1254_v7  ;;  %v1278_v16 = vand.u32 2147483648, %v1254_v7  ;;  %v1276_v17 = vand.u32 2147483647, %v1254_v7  ;;  %vm1272_vm12 = vweird.f32 %v1254_v7 }
 0x2bf   : > { %v1279_v35 = vor.u32 1.1754944e-38, %v1278_v16  ;;  %vm1277_vm9 = vcmp.eq.f32.partialorder %v1276_v17, 8.507059e+37 }
 0x2c1   : > { %v3403_v8 = vpop.xlane.xlu2 %1429 }
 0x2c2   : > { %2709 = vrcp.f32 %v3403_v8  ;;  %vm1445_vm11 = vweird.f32 %v3403_v8  ;;  %v1449_v28 = vand.u32 2147483647, %v3403_v8  ;;  %v1451_v43 = vand.u32 2147483648, %v3403_v8 }
 0x2c3   : > { %v2708_v9 = vpop.eup %2707 }
 0x2c4   : > { %v1268_v10 = vmul.f32 %v2708_v9, %v1254_v7  ;;  %v1257_v11 = vpop.xlane.xlu1 %1256  ;;  %vm1273_vm15 = vweird.f32 %v2708_v9 }
 0x2c5   : > { %2711 = vrcp.f32 %v1257_v11  ;;  %vm1274_vm0 = vmor %vm1272_vm12, %vm1273_vm15  ;;  %v1291_v50 = vand.u32 2147483647, %v1257_v11  ;;  %v1293_v52 = vand.u32 2147483648, %v1257_v11  ;;  %vm1287_vm14 = vweird.f32 %v1257_v11 }
 0x2c6   : > { %v1269_v12 = vsub.f32 1.0, %v1268_v10 }
 0x2c7   : > { %vm1292_vm12 = vcmp.eq.f32.partialorder %v1291_v50, 8.507059e+37  ;;  %v1294_v3 = vor.u32 1.1754944e-38, %v1293_v52 }
 0x2c8   : > { %v3406_v14 = vpop.eup %2709  ;;  %v1270_v18 = vmul.f32 %v2708_v9, %v1269_v12  ;;  %v1452_v12 = vor.u32 1.1754944e-38, %v1451_v43 }
 0x2c9   : > { %v1441_v20 = vmul.f32 %v3406_v14, %v3403_v8  ;;  %v3410_v22 = vpop.xlane.xlu0 %1432  ;;  %v1568_v25 = vpop.xlane.xlu2 %1567  ;;  %vm1446_vm5 = vweird.f32 %v3406_v14 }
 0x2ca   : > { %2713 = vrcp.f32 %v3410_v22  ;;  %v1271_v19 = vadd.f32 %v2708_v9, %v1270_v18  ;;  %v1576_v29 = vsub.f32 %v3322_v37, %v1568_v25  ;;  %vm3442_vm15 = vmor %vm1445_vm11, %vm1446_vm5  ;;  %v1464_v5 = vand.u32 2147483647, %v3410_v22 }
 0x2cb   : > { %v1442_v27 = vsub.f32 1.0, %v1441_v20  ;;  %v2712_v33 = vpop.eup %2711  ;;  %v1466_v34 = vand.u32 2147483648, %v3410_v22  ;;  %vm1450_vm11 = vcmp.eq.f32.partialorder %v1449_v28, 8.507059e+37  ;;  %vm1460_vm5 = vweird.f32 %v3410_v22 }
 0x2cc   : > { %v1275_v39 = vsel %vm1274_vm0, %v2708_v9, %v1271_v19  ;;  %v1283_v41 = vmul.f32 %v2712_v33, %v1257_v11  ;;  %v1565_v23 = vpop.xlane.xlu1 %1564  ;;  %v1584_v46 = vmul.f32 1.442695, %v1576_v29  ;;  %vm1288_vm4 = vweird.f32 %v2712_v33 }
 0x2cd   : > { %v1443_v40 = vmul.f32 %v3406_v14, %v1442_v27  ;;  %v1280_v45 = vsel %vm1277_vm9, %v1279_v35, %v1275_v39  ;;  %v1575_v48 = vsub.f32 %v3320_v36, %v1565_v23  ;;  %vm1289_vm0 = vmor %vm1287_vm14, %vm1288_vm4  ;;  %vm1465_vm4 = vcmp.eq.f32.partialorder %v1464_v5, 8.507059e+37 }
 0x2ce   : > { %v3423_v37 = vmul.f32 %v3326_v47, %v1280_v45  ;;  %v1284_v49 = vsub.f32 1.0, %v1283_v41  ;;  %2715 = vpow2.f32 %v1584_v46  ;;  %v1467_v25 = vor.u32 1.1754944e-38, %v1466_v34 }
 0x2cf   : > { %v1582_v26 = vmul.f32 1.442695, %v1575_v48  ;;  %v1444_v56 = vadd.f32 %v3406_v14, %v1443_v40  ;;  %vm3951_vm14 = vcmask 64512  }
 0x2d0   : > { %v2714_v51 = vpop.eup %2713  ;;  %2154 = vst.msk [vmem:[%s3419_s17] sm:$0xff] %vm3946_vm8, %v3423_v37  ;;  %v1285_v58 = vmul.f32 %v2712_v33, %v1284_v49 }
 0x2d1   : > { %v1456_v36 = vmul.f32 %v2714_v51, %v3410_v22  ;;  %v3432_v47 = vpop.xlane.xlu0 %1259  ;;  %v3434_v59 = vpop.xlane.xlu2 %1435  ;;  %2717 = vpow2.f32 %v1582_v26  ;;  %v1448_v7 = vsel %vm3442_vm15, %v3406_v14, %v1444_v56  ;;  %vm1461_vm9 = vweird.f32 %v2714_v51 }
 0x2d2   : > { %v1286_v30 = vadd.f32 %v2712_v33, %v1285_v58  ;;  %2719 = vrcp.f32 %v3432_v47  ;;  %v1453_v14 = vsel %vm1450_vm11, %v1452_v12, %v1448_v7  ;;  %vm1462_vm8 = vmor %vm1460_vm5, %vm1461_vm9  ;;  %vm3952_vm15 = vcmask 72704  }
 0x2d3   : > { %v1457_v1 = vsub.f32 1.0, %v1456_v36  ;;  %2721 = vrcp.f32 %v3434_v59  ;;  %vm3954_vm9 = vmmov %vm3952_vm15  ;;  %v1454_v46 = vmul.f32 %v3330_v44, %v1453_v14  ;;  %v1308_v50 = vand.u32 2147483648, %v3432_v47 }
 0x2d4   : > { %v1290_v8 = vsel %vm1289_vm0, %v2712_v33, %v1286_v30  ;;  %v3453_v10 = vpop.xlane.xlu1 %1262  ;;  %v3455_v11 = vpop.eup %2715  ;;  %v1306_v33 = vand.u32 2147483647, %v3432_v47  ;;  %vm1302_vm0 = vweird.f32 %v3432_v47  ;;  %v1481_v52 = vand.u32 2147483648, %v3434_v59 }
 0x2d5   : > { %v1458_v9 = vmul.f32 %v2714_v51, %v1457_v1  ;;  %v1295_v16 = vsel %vm1292_vm12, %v1294_v3, %v1290_v8  ;;  %2723 = vrcp.f32 %v3453_v10  ;;  %v1597_v19 = vsel %vm3951_vm14, %v3455_v11, 0.0  ;;  %vm3953_vm12 = vmmov %vm3951_vm14 }
 0x2d6   : > { %v1296_v18 = vmul.f32 %v3335_v61, %v1295_v16  ;;  %1598 = vadd.xlane.f32.xlu1 %v1597_v19  ;;  %vm3485_vm11 = vcmp.eq.f32.partialorder %v1306_v33, 8.507059e+37  ;;  %vm1475_vm5 = vweird.f32 %v3434_v59  ;;  %v1321_v28 = vand.u32 2147483647, %v3453_v10 }
 0x2d7   : > { %v1459_v17 = vadd.f32 %v2714_v51, %v1458_v9  ;;  %v3460_v20 = vpop.eup %2717  ;;  %v1323_v43 = vand.u32 2147483648, %v3453_v10  ;;  %v1309_v5 = vor.u32 1.1754944e-38, %v1308_v50  ;;  %v1482_v34 = vor.u32 1.1754944e-38, %v1481_v52 }
 0x2d8   : > { %v3464_v27 = vpop.eup %2719  ;;  %2155 = vst.msk [vmem:[%s3419_s17 + $0x8] sm:$0xff] %vm3952_vm15, %v1296_v18  ;;  %v1594_v22 = vsel %vm3953_vm12, %v3460_v20, 0.0  ;;  %v1342_v35 = vpack.c.bf16 %v1296_v18, %v3423_v37  ;;  %vm3957_vm15 = vmmov %vm3953_vm12  ;;  %vm3525_vm3 = vcmp.eq.f32.partialorder %v1321_v28, 8.507059e+37 }
 0x2d9   : > { %v1463_v29 = vsel %vm1462_vm8, %v2714_v51, %v1459_v17  ;;  %v3469_v61 = vpop.xlane.xlu0 %1438  ;;  %v3474_v39 = vpop.eup %2721  ;;  %v1298_v41 = vmul.f32 %v3464_v27, %v3432_v47  ;;  %1595 = vadd.xlane.f32.xlu0 %v1594_v22  ;;  %vm1303_vm8 = vweird.f32 %v3464_v27 }
 0x2da   : > { %v1468_v40 = vsel %vm1465_vm4, %v1467_v25, %v1463_v29  ;;  %v1471_v23 = vmul.f32 %v3474_v39, %v3434_v59  ;;  %2451 = vmatmul.msk.bf16.vlgmr.msrb.gmra.mxu1 %vm3954_vm9, %v1342_v35  ;;  %2725 = vrcp.f32 %v3469_v61  ;;  %vm1317_vm4 = vweird.f32 %v3453_v10  ;;  %vm3516_vm12 = vmor %vm1302_vm0, %vm1303_vm8 }
 0x2db   : > { %v2724_v45 = vpop.eup %2723  ;;  %v1469_v48 = vmul.f32 %v3340_v4, %v1468_v40  ;;  %v1299_v37 = vsub.f32 1.0, %v1298_v41  ;;  %v1479_v4 = vand.u32 2147483647, %v3434_v59  ;;  %v1494_v12 = vand.u32 2147483647, %v3469_v61 }
 0x2dc   : > { %v1472_v51 = vsub.f32 1.0, %v1471_v23  ;;  %v1313_v26 = vmul.f32 %v2724_v45, %v3453_v10  ;;  %v3492_v56 = vpop.xlane.xlu2 %1265  ;;  %v1572_v58 = vpop.xlane.xlu1 %1571  ;;  %vm1318_vm14 = vweird.f32 %v2724_v45  ;;  %vm1476_vm9 = vweird.f32 %v3474_v39 }
 0x2dd   : > { %v1300_v44 = vmul.f32 %v3464_v27, %v1299_v37  ;;  %2727 = vrcp.f32 %v3492_v56  ;;  %v1577_v1 = vsub.f32 %v3324_v38, %v1572_v58  ;;  %v1500_v3 = vpack.c.bf16 %v1469_v48, %v1454_v46  ;;  %vm1319_vm0 = vmor %vm1317_vm4, %vm1318_vm14 }
 0x2de   : > { %v1314_v36 = vsub.f32 1.0, %v1313_v26  ;;  %v1473_v30 = vmul.f32 %v3474_v39, %v1472_v51  ;;  %vm3521_vm6 = vcmp.eq.f32.partialorder %v1479_v4, 8.507059e+37  ;;  %v1324_v29 = vor.u32 1.1754944e-38, %v1323_v43  ;;  %vm3552_vm4 = vmor %vm1475_vm5, %vm1476_vm9 }
 0x2df   : > { %v1301_v63 = vadd.f32 %v3464_v27, %v1300_v44  ;;  %v1586_v16 = vmul.f32 1.442695, %v1577_v1  ;;  %2460 = vmatmul.msk.bf16.vlgmr.msra.gmra.mxu2 %vm3957_vm15, %v1500_v3  ;;  %vm1490_vm8 = vweird.f32 %v3469_v61  ;;  %v1496_v35 = vand.u32 2147483648, %v3469_v61 }
 0x2e0   : > { %v1315_v7 = vmul.f32 %v2724_v45, %v1314_v36  ;;  %v3507_v9 = vpop.eup %2725  ;;  %v1474_v47 = vadd.f32 %v3474_v39, %v1473_v30  ;;  %vm3541_vm15 = vcmp.eq.f32.partialorder %v1494_v12, 8.507059e+37  ;;  %v1338_v23 = vand.u32 2147483648, %v3492_v56 }
 0x2e1   : > { %v3505_v8 = vpop.xlane.xlu0 %1762  ;;  %v1486_v25 = vmul.f32 %v3507_v9, %v3469_v61  ;;  %v1305_v33 = vsel %vm3516_vm12, %v3464_v27, %v1301_v63  ;;  %vm1332_vm14 = vweird.f32 %v3492_v56  ;;  %v1497_v4 = vor.u32 1.1754944e-38, %v1496_v35 }
 0x2e2   : > { %2729 = vrcp.f32 %v3505_v8  ;;  %v1316_v17 = vadd.f32 %v2724_v45, %v1315_v7  ;;  %v1310_v27 = vsel %vm3485_vm11, %v1309_v5, %v1305_v33  ;;  %vm1491_vm11 = vweird.f32 %v3507_v9 }
 0x2e3   : > { %v2728_v19 = vpop.eup %2727  ;;  %2731 = vpow2.f32 %v1586_v16  ;;  %v1487_v22 = vsub.f32 1.0, %v1486_v25  ;;  %v1311_v50 = vmul.f32 %v3349_v13, %v1310_v27  ;;  %v1339_v36 = vor.u32 1.1754944e-38, %v1338_v23  ;;  %vm3582_vm9 = vmor %vm1490_vm8, %vm1491_vm11 }
 0x2e4   : > { %v1328_v40 = vmul.f32 %v2728_v19, %v3492_v56  ;;  %v1320_v46 = vsel %vm1319_vm0, %v2724_v45, %v1316_v17  ;;  %v1478_v45 = vsel %vm3552_vm4, %v3474_v39, %v1474_v47  ;;  %vm1333_vm5 = vweird.f32 %v2728_v19 }
 0x2e5   : > { %v1488_v48 = vmul.f32 %v3507_v9, %v1487_v22  ;;  %v1325_v51 = vsel %vm3525_vm3, %v1324_v29, %v1320_v46  ;;  %vm3968_vm3 = vcmask 72704   ;;  %vm3972_vm0 = vcmask 60416   ;;  %vm3591_vm4 = vmor %vm1332_vm14, %vm1333_vm5 }
 0x2e6   : > { %v1329_v37 = vsub.f32 1.0, %v1328_v40  ;;  %v1326_v59 = vmul.f32 %v3359_v24, %v1325_v51  ;;  %2156 = vst.msk [vmem:[%s3419_s17 + $0x10] sm:$0xff] %vm3968_vm3, %v1311_v50  ;;  %v1336_v24 = vand.u32 2147483647, %v3492_v56  ;;  %vm3969_vm12 = vmmov %vm3968_vm3  ;;  %v1782_v3 = vand.u32 2147483647, %v3505_v8 }
 0x2e7   : > { %v1489_v52 = vadd.f32 %v3507_v9, %v1488_v48  ;;  %v1784_v61 = vand.u32 2147483648, %v3505_v8  ;;  %v1483_v5 = vsel %vm3521_vm6, %v1482_v34, %v1478_v45  ;;  %vm3975_vm11 = vmmov %vm3968_vm3  ;;  %vm1778_vm14 = vweird.f32 %v3505_v8 }
 0x2e8   : > { %v2730_v49 = vpop.eup %2729  ;;  %v1330_v26 = vmul.f32 %v2728_v19, %v1329_v37  ;;  %2157 = vst.msk [vmem:[%s3419_s17 + $0x18] sm:$0xff] %vm3969_vm12, %v1326_v59  ;;  %v1343_v30 = vpack.c.bf16 %v1326_v59, %v1311_v50  ;;  %vm1337_vm6 = vcmp.eq.f32.partialorder %v1336_v24, 8.507059e+37  ;;  %vm3976_vm3 = vcmask 68608  }
 0x2e9   : > { %v1774_v13 = vmul.f32 %v2730_v49, %v3505_v8  ;;  %v3568_v58 = vpop.xlane.xlu1 %1765  ;;  %v3572_v44 = vpop.eup %2731  ;;  %v1493_v7 = vsel %vm3582_vm9, %v3507_v9, %v1489_v52  ;;  %vm1779_vm8 = vweird.f32 %v2730_v49  ;;  %v1484_v9 = vmul.f32 %v3352_v15, %v1483_v5 }
 0x2ea   : > { %2733 = vrcp.f32 %v3568_v58  ;;  %v1331_v28 = vadd.f32 %v2728_v19, %v1330_v26  ;;  %v1600_v63 = vsel %vm3972_vm0, %v3572_v44, 0.0  ;;  %2452 = vmatmul.msk.bf16.gmra.mxu1 %vm3975_vm11, %v1343_v30  ;;  %v1498_v16 = vsel %vm3541_vm15, %v1497_v4, %v1493_v7  ;;  %vm1780_vm5 = vmor %vm1778_vm14, %vm1779_vm8 }
 0x2eb   : > { %v1775_v43 = vsub.f32 1.0, %v1774_v13  ;;  %1601 = vadd.xlane.f32.xlu2 %v1600_v63  ;;  %v1499_v18 = vmul.f32 %v3364_v31, %v1498_v16  ;;  %v1785_v25 = vor.u32 1.1754944e-38, %v1784_v61  ;;  %vm1783_vm15 = vcmp.eq.f32.partialorder %v1782_v3, 8.507059e+37  ;;  %vm3978_vm0 = vmmov %vm3975_vm11 }
 0x2ec   : > { %v3606_v12 = vpop.xlane.xlu2 %1589  ;;  %v1335_v38 = vsel %vm3591_vm4, %v2728_v19, %v1331_v28  ;;  %vm3977_vm12 = vcmask 64512   ;;  %v1797_v41 = vand.u32 2147483647, %v3568_v58  ;;  %vm1793_vm4 = vweird.f32 %v3568_v58 }
 0x2ed   : > { %v1776_v56 = vmul.f32 %v2730_v49, %v1775_v43  ;;  %2735 = vrcp.f32 %v3606_v12  ;;  %v1340_v17 = vsel %vm1337_vm6, %v1339_v36, %v1335_v38  ;;  %v1501_v8 = vpack.c.bf16 %v1499_v18, %v1484_v9 }
 0x2ee   : > { %v1341_v47 = vmul.f32 %v3368_v21, %v1340_v17  ;;  %v1799_v21 = vand.u32 2147483648, %v3568_v58  ;;  %vm1798_vm11 = vcmp.eq.f32.partialorder %v1797_v41, 8.507059e+37  ;;  %v1614_v28 = vand.u32 2147483648, %v3606_v12 }
 0x2ef   : > { %v1777_v34 = vadd.f32 %v2730_v49, %v1776_v56  ;;  %2461 = vmatmul.msk.bf16.gmra.mxu2 %vm3977_vm12, %v1501_v8 }
 0x2f0   : > { %v2734_v14 = vpop.eup %2733  ;;  %2158 = vst.msk [vmem:[%s3419_s17 + $0x20] sm:$0xf] %vm3976_vm3, %v1341_v47  ;;  %v1800_v48 = vor.u32 1.1754944e-38, %v1799_v21  ;;  %v1344_v13 = vpack.c.bf16 %v1341_v47, %v1341_v47  ;;  %vm1608_vm3 = vweird.f32 %v3606_v12  ;;  %s2213_s17 = sshll.u32 %s2210_s28, 4  ;;  %s2214_s17 = int_to_ptr.hbm [resolvable:$true] %s2213_s17 }
 0x2f1   : > { %v1781_v29 = vsel %vm1780_vm5, %v2730_v49, %v1777_v34  ;;  %v1789_v19 = vmul.f32 %v2734_v14, %v3568_v58  ;;  %v1769_v33 = vpop.xlane.xlu1 %1768  ;;  %vm1794_vm9 = vweird.f32 %v2734_v14  ;;  %vm3979_vm5 = vmmov %vm3978_vm0  ;;  %v1615_v34 = vor.u32 1.1754944e-38, %v1614_v28  ;;  %s2763_s20 = sshra.s32 %s2214_s17, 4  ;;  %s2764_s20 = int_to_ptr.hbm [resolvable:$true] %s2763_s20 }
 0x2f2   : > { %v1786_v22 = vsel %vm1783_vm15, %v1785_v25, %v1781_v29  ;;  %2737 = vrcp.f32 %v1769_v33  ;;  %vm1795_vm8 = vmor %vm1793_vm4, %vm1794_vm9  ;;  %v1812_v26 = vand.u32 2147483647, %v1769_v33  ;;  %v1814_v24 = vand.u32 2147483648, %v1769_v33  ;;  %s2765_s2 = scalar_lea.hbm %s2764_s20, 32  ;;  %p2770_p0 = scmp.lt.s32.totalorder %s2764_s20, %s3857_s19 }
 0x2f3   : > { %v3622_v15 = vmul.f32 %v3375_v42, %v1786_v22  ;;  %v1790_v31 = vsub.f32 1.0, %v1789_v19  ;;  %v3625_v35 = vpop.eup %2735  ;;  %vm3980_vm15 = vmmov %vm3978_vm0  ;;  %vm1808_vm12 = vweird.f32 %v1769_v33  ;;  %p2766_p11 = scmp.ne.s32.totalorder %s2764_s20, %s2765_s2 }
 0x2f4   : > { %v1604_v23 = vmul.f32 %v3625_v35, %v3606_v12  ;;  %v1593_v27 = vpop.xlane.xlu0 %1592  ;;  %vm1609_vm6 = vweird.f32 %v3625_v35  ;;  %v1815_v5 = vor.u32 1.1754944e-38, %v1814_v24 }
 0x2f5   : > { %v1791_v40 = vmul.f32 %v2734_v14, %v1790_v31  ;;  %2159 = vst.msk [vmem:[%s3631_s24] sm:$0xff] %vm3978_vm0, %v3622_v15  ;;  %2739 = vrcp.f32 %v1593_v27  ;;  %vm3647_vm9 = vmor %vm1608_vm3, %vm1609_vm6  ;;  %vm1813_vm0 = vcmp.eq.f32.partialorder %v1812_v26, 8.507059e+37  ;;  %v1627_v7 = vand.u32 2147483647, %v1593_v27  ;;  %p2767_p12 = pnand %p2766_p11, %p2988_p5 }
 0x2f6   : > { %v1605_v46 = vsub.f32 1.0, %v1604_v23  ;;  %v1629_v56 = vand.u32 2147483648, %v1593_v27  ;;  %vm1623_vm6 = vweird.f32 %v1593_v27 }
 0x2f7   : > { %v1792_v42 = vadd.f32 %v2734_v14, %v1791_v40  ;;  %p2768_p13 = pneg %p2767_p12 }
 0x2f8   : > { %v2738_v10 = vpop.eup %2737  ;;  %v1606_v50 = vmul.f32 %v3625_v35, %v1605_v46  ;;  %v1630_v47 = vor.u32 1.1754944e-38, %v1629_v56 }
 0x2f9   : > { %v1796_v37 = vsel %vm1795_vm8, %v2734_v14, %v1792_v42  ;;  %v1804_v51 = vmul.f32 %v2738_v10, %v1769_v33  ;;  %v1772_v49 = vpop.xlane.xlu2 %1771  ;;  %vm1809_vm14 = vweird.f32 %v2738_v10 }
 0x2fa   : > { %v1801_v59 = vsel %vm1798_vm11, %v1800_v48, %v1796_v37  ;;  %2741 = vrcp.f32 %v1772_v49  ;;  %v1607_v58 = vadd.f32 %v3625_v35, %v1606_v50  ;;  %2453 = vmatmul.msk.bf16.gmra.mxu1 %vm3979_vm5, %v1344_v13  ;;  %vm1810_vm4 = vmor %vm1808_vm12, %vm1809_vm14  ;;  %v1829_v29 = vand.u32 2147483648, %v1772_v49 }
 0x2fb   : > { %v1802_v45 = vmul.f32 %v3381_v54, %v1801_v59  ;;  %v1805_v52 = vsub.f32 1.0, %v1804_v51  ;;  %v2740_v4 = vpop.eup %2739  ;;  %v1612_v54 = vand.u32 2147483647, %v3606_v12  ;;  %v1827_v33 = vand.u32 2147483647, %v1772_v49  ;;  %vm3983_vm12 = vmmov %vm3979_vm5 }
 0x2fc   : > { %v1619_v39 = vmul.f32 %v2740_v4, %v1593_v27  ;;  %v1611_v61 = vsel %vm3647_vm9, %v3625_v35, %v1607_v58  ;;  %vm1624_vm8 = vweird.f32 %v2740_v4  ;;  %vm1823_vm9 = vweird.f32 %v1772_v49 }
 0x2fd   : > { %v1806_v36 = vmul.f32 %v2738_v10, %v1805_v52  ;;  %2160 = vst.msk [vmem:[%s3631_s24 + $0x8] sm:$0xff] %vm3980_vm15, %v1802_v45  ;;  %v1833_v1 = vpack.c.bf16 %v1802_v45, %v3622_v15  ;;  %vm1613_vm11 = vcmp.eq.f32.partialorder %v1612_v54, 8.507059e+37  ;;  %vm1625_vm14 = vmor %vm1623_vm6, %vm1624_vm8  ;;  %vm1628_vm15 = vcmp.eq.f32.partialorder %v1627_v7, 8.507059e+37 }
 0x2fe   : > { %v1620_v30 = vsub.f32 1.0, %v1619_v39  ;;  %v1616_v25 = vsel %vm1613_vm11, %v1615_v34, %v1611_v61  ;;  %vm3984_vm8 = vcmask 64512   ;;  %vm3985_vm11 = vmmov %vm3979_vm5 }
 0x2ff   : > { %v1807_v63 = vadd.f32 %v2738_v10, %v1806_v36  ;;  %2480 = vmatmul.msk.bf16.vlgmr.msrb.gmra.mxu2 %vm3979_vm5, %v1833_v1  ;;  %v1617_v15 = vmul.f32 %v3386_v60, %v1616_v25  ;;  %vm3986_vm6 = vmmov %vm3979_vm5 }
 0x300   : > { %v2742_v3 = vpop.eup %2741  ;;  %v1621_v12 = vmul.f32 %v2740_v4, %v1620_v30 }
 0x301   : > { %v1819_v16 = vmul.f32 %v2742_v3, %v1772_v49  ;;  %v1811_v38 = vsel %vm1810_vm4, %v2738_v10, %v1807_v63  ;;  %vm1824_vm3 = vweird.f32 %v2742_v3  ;;  %vm1828_vm4 = vcmp.eq.f32.partialorder %v1827_v33, 8.507059e+37 }
 0x302   : > { %v1816_v9 = vsel %vm1813_vm0, %v1815_v5, %v1811_v38  ;;  %v1622_v18 = vadd.f32 %v2740_v4, %v1621_v12  ;;  %vm1825_vm0 = vmor %vm1823_vm9, %vm1824_vm3 }
 0x303   : > { %v1820_v17 = vsub.f32 1.0, %v1819_v16  ;;  %v1817_v14 = vmul.f32 %v3391_v62, %v1816_v9  ;;  %v1830_v62 = vor.u32 1.1754944e-38, %v1829_v29 }
 0x304   : > { %v1626_v19 = vsel %vm1625_vm14, %v2740_v4, %v1622_v18 }
 0x305   : > { %v1821_v8 = vmul.f32 %v2742_v3, %v1820_v17  ;;  %2161 = vst.msk [vmem:[%s3631_s24 + $0x10] sm:$0xff] %vm3983_vm12, %v1817_v14  ;;  %v1631_v22 = vsel %vm1628_vm15, %v1630_v47, %v1626_v19 }
 0x306   : > { %v1632_v31 = vmul.f32 %v3395_v32, %v1631_v22 }
 0x307   : > { %v1822_v35 = vadd.f32 %v2742_v3, %v1821_v8 }
 0x308   : > { %v1678_v21 = vpack.c.bf16 %v1632_v31, %v1617_v15 }
 0x309   : > { %v1826_v40 = vsel %vm1825_vm0, %v2742_v3, %v1822_v35 }
 0x30a   : > { %v1831_v41 = vsel %vm1828_vm4, %v1830_v62, %v1826_v40  ;;  %2471 = vmatmul.msk.bf16.vlgmr.msra.gmra.mxu1 %vm3984_vm8, %v1678_v21 }
 0x30b   : > { %v1832_v23 = vmul.f32 %v3399_v6, %v1831_v41 }
 0x30d   : > { %2162 = vst.msk [vmem:[%s3631_s24 + $0x18] sm:$0xff] %vm3985_vm11, %v1832_v23  ;;  %v1834_v27 = vpack.c.bf16 %v1832_v23, %v1817_v14  ;;  %s2769_s24 = scalar_lea.hbm %s3857_s19, 64 }
 0x30e   : > { %p2771_p1 = scmp.lt.s32.totalorder %s2769_s24, %s2765_s2 }
 0x30f   : > { %2481 = vmatmul.msk.bf16.gmra.mxu2 %vm3986_vm6, %v1834_v27 }
 0x310   : > { %p2772_p2 = por %p2771_p1, %p2770_p0 }
 0x312   : > { %p2773_p3 = pnand %p2772_p2, %p2768_p13 }
 0x349   : > { %v1599_v60 = vpop.xlane.xlu1 %1598 }
 0x34a   : > { %2743 = vrcp.f32 %v1599_v60  ;;  %v1659_v50 = vand.u32 2147483648, %v1599_v60  ;;  %v1657_v6 = vand.u32 2147483647, %v1599_v60  ;;  %vm1653_vm15 = vweird.f32 %v1599_v60 }
 0x34c   : > { %v1596_v32 = vpop.xlane.xlu0 %1595  ;;  %v1660_v4 = vor.u32 1.1754944e-38, %v1659_v50  ;;  %vm1658_vm9 = vcmp.eq.f32.partialorder %v1657_v6, 8.507059e+37  ;;  %v1936_v50 = vld [vmem:[%s3851_s13] sm:$0xf] }
 0x34d   : > { %2745 = vrcp.f32 %v1596_v32  ;;  %v1644_v59 = vand.u32 2147483648, %v1596_v32  ;;  %v1642_v26 = vand.u32 2147483647, %v1596_v32  ;;  %vm1638_vm12 = vweird.f32 %v1596_v32  ;;  %v1922_v6 = vld [vmem:[%s3850_s12] sm:$0xff] }
 0x34f   : > { %v1645_v24 = vor.u32 1.1754944e-38, %v1644_v59  ;;  %vm1643_vm4 = vcmp.eq.f32.partialorder %v1642_v26, 8.507059e+37  ;;  %v1923_v59 = vld [vmem:[%s3850_s12 + $0x8] sm:$0x1]  ;;  %v2612_v26 = vld [vmem:[%s3990_s6 + $0x38] sm:$0xff] }
 0x350   : > { %v2744_v42 = vpop.eup %2743 }
 0x351   : > { %v1649_v10 = vmul.f32 %v2744_v42, %v1599_v60  ;;  %vm1654_vm5 = vweird.f32 %v2744_v42 }
 0x352   : > { %vm1655_vm3 = vmor %vm1653_vm15, %vm1654_vm5 }
 0x353   : > { %v2746_v46 = vpop.eup %2745  ;;  %v1650_v37 = vsub.f32 1.0, %v1649_v10  ;;  %vm3987_vm15 = vmmov %vm3984_vm8 }
 0x354   : > { %v1634_v48 = vmul.f32 %v2746_v46, %v1596_v32  ;;  %vm1639_vm14 = vweird.f32 %v2746_v46 }
 0x355   : > { %v1651_v49 = vmul.f32 %v2744_v42, %v1650_v37  ;;  %vm1640_vm0 = vmor %vm1638_vm12, %vm1639_vm14  ;;  %vm3988_vm12 = vcmask 261120  }
 0x356   : > { %v1635_v51 = vsub.f32 1.0, %v1634_v48  ;;  %v2496_v48 = vor.u32 %v2603_v53, %v2495_v55 }
 0x357   : > { %v3667_v45 = vpop.f32.mrf.mxu1  ;;  %v1652_v13 = vadd.f32 %v2744_v42, %v1651_v49  ;;  %v2847_v49 = vmov 0  }
 0x358   : > { %v1636_v52 = vmul.f32 %v2746_v46, %v1635_v51  ;;  %2673 = vset.pattern.permute.xlu1 %v2847_v49  ;;  %2672 = vset.pattern.permute.xlu0 %v2847_v49 }
 0x359   : > { %v1656_v36 = vsel %vm1655_vm3, %v2744_v42, %v1652_v13  ;;  %vm1904_vm3 = vcmask 1041408   ;;  %v2484_v42 = vld [vmem:[%s3849_s11] sm:$0xf]  ;;  %1926 = vperm.xlu0 %2672, %v1922_v6   ;;  %1931 = vperm.xlu1 %2673, %v1923_v59   ;;  %v2611_v13 = vld [vmem:[%s3990_s6 + $0x30] sm:$0xff] }
 0x35a   : > { %v1637_v58 = vadd.f32 %v2746_v46, %v1636_v52  ;;  %v1661_v54 = vsel %vm1658_vm9, %v1660_v4, %v1656_v36  ;;  %2674 = vset.pattern.permute.xlu2 %v2847_v49  ;;  %v1978_v52 = vld [vmem:[%s3853_s15] sm:$0xff] }
 0x35b   : > { %v1662_v30 = vmul.f32 %v3455_v11, %v1661_v54  ;;  %1981 = vperm.xlu2 %2674, %v1978_v52  }
 0x35c   : > { %v1641_v39 = vsel %vm1640_vm0, %v2746_v46, %v1637_v58  ;;  %v2604_v46 = vld [vmem:[%s3849_s11] sm:$0x10]  ;;  %v2610_v58 = vld [vmem:[%s3990_s6 + $0x28] sm:$0xff] }
 0x35d   : > { %v1646_v28 = vsel %vm1643_vm4, %v1645_v24, %v1641_v39  ;;  %v2485_v10 = vor.u32 %v2604_v46, %v2484_v42  ;;  %v2609_v24 = vld [vmem:[%s3990_s6 + $0x20] sm:$0xff] }
 0x35e   : > { %v1602_v43 = vpop.xlane.xlu2 %1601  ;;  %v1647_v63 = vmul.f32 %v3460_v20, %v1646_v28 }
 0x35f   : > { %2747 = vrcp.f32 %v1602_v43  ;;  %v1368_v1 = vpop.f32.mrf.mxu1  ;;  %v1674_v12 = vand.u32 2147483648, %v1602_v43  ;;  %v1672_v34 = vand.u32 2147483647, %v1602_v43  ;;  %vm1668_vm6 = vweird.f32 %v1602_v43 }
 0x360   : > { %v1679_v3 = vpack.c.bf16 %v1662_v30, %v1647_v63  ;;  %v2501_v21 = vpack.c.bf16 %v1368_v1, %v3667_v45  ;;  %v1939_v1 = vld [vmem:[%s3852_s14] sm:$0xf] }
 0x361   : > { %v1675_v20 = vor.u32 1.1754944e-38, %v1674_v12  ;;  %vm1673_vm14 = vcmp.eq.f32.partialorder %v1672_v34, 8.507059e+37  ;;  %v2616_v12 = vld [vmem:[%s3846_s8 + $0x18] sm:$0xff] }
 0x362   : > { %2472 = vmatmul.msk.bf16.gmra.mxu1 %vm3984_vm8, %v1679_v3  ;;  %v1520_v61 = vpop.f32.mrf.mxu2  ;;  %v2620_v3 = vld [vmem:[%s3846_s8 + $0x38] sm:$0xff] }
 0x365   : > { %v2748_v5 = vpop.eup %2747 }
 0x366   : > { %v1664_v7 = vmul.f32 %v2748_v5, %v1602_v43  ;;  %vm1669_vm11 = vweird.f32 %v2748_v5 }
 0x367   : > { %v1371_v16 = vpop.f32.mrf.mxu1  ;;  %vm1670_vm5 = vmor %vm1668_vm6, %vm1669_vm11 }
 0x368   : > { %v1665_v56 = vsub.f32 1.0, %v1664_v7  ;;  %v2605_v7 = vld [vmem:[%s3990_s6] sm:$0xff] }
 0x36a   : > { %v1666_v38 = vmul.f32 %v2748_v5, %v1665_v56  ;;  %v1522_v9 = vpop.f32.mrf.mxu2  ;;  %v2617_v56 = vld [vmem:[%s3846_s8 + $0x20] sm:$0xff] }
 0x36b   : > { %v2515_v62 = vpack.c.bf16 %v1522_v9, %v1520_v61  ;;  %v2606_v61 = vld [vmem:[%s3990_s6 + $0x8] sm:$0xff] }
 0x36c   : > { %v1667_v18 = vadd.f32 %v2748_v5, %v1666_v38 }
 0x36e   : > { %v1671_v11 = vsel %vm1670_vm5, %v2748_v5, %v1667_v18  ;;  %v2618_v5 = vld [vmem:[%s3846_s8 + $0x28] sm:$0xff] }
 0x36f   : > { %v1676_v17 = vsel %vm1673_vm14, %v1675_v20, %v1671_v11  ;;  %v1373_v25 = vpop.f32.mrf.mxu1 }
 0x370   : > { %v1677_v14 = vmul.f32 %v3572_v44, %v1676_v17  ;;  %v2498_v35 = vpack.c.bf16 %v1373_v25, %v1371_v16  ;;  %v2615_v16 = vld [vmem:[%s3846_s8 + $0x10] sm:$0xff] }
 0x372   : > { %v1680_v47 = vpack.c.bf16 %v1677_v14, %v1677_v14  ;;  %v1525_v29 = vpop.f32.mrf.mxu2 }
 0x374   : > { %2473 = vmatmul.msk.bf16.gmra.mxu1 %vm3987_vm15, %v1680_v47 }
 0x377   : > { %v1376_v19 = vpop.f32.mrf.mxu1 }
 0x378   : > { %v1384_v8 = vsel %vm3257_vm10, %v1376_v19, 0.0 }
 0x379   : > { %v1868_v33 = vpack.c.bf16 %v1384_v8, %v1384_v8  ;;  %v2614_v8 = vld [vmem:[%s3846_s8 + $0x8] sm:$0xff] }
 0x37a   : > { %v1527_v15 = vpop.f32.mrf.mxu2 }
 0x37b   : > { %v1906_v22 = vsel %vm1904_vm3, %v1868_v33, 0  ;;  %v2512_v31 = vpack.c.bf16 %v1527_v15, %v1525_v29 }
 0x37c   : > { %1913 = vmatpush.bf16.msrb.mxu0 %v1906_v22  ;;  %v2613_v22 = vld [vmem:[%s3846_s8] sm:$0xff] }
 0x37d   : > { %2513 = vmatpush.bf16.msk.msra.mxu2 %vm3242_vm7, %v2512_v31 }
 0x37f   : > { %v1378_v44 = vpop.f32.mrf.mxu1 }
 0x380   : > { %2499 = vmatpush.bf16.msk.msrb.mxu0 %vm3246_vm2, %v2498_v35 }
 0x381   : > { %2516 = vmatpush.bf16.msk.msra.mxu2 %vm3212_vm1, %v2515_v62 }
 0x382   : > { %v1850_v40 = vpop.f32.mrf.mxu2 }
 0x384   : > { %2502 = vmatpush.bf16.msk.msrb.mxu0 %vm3919_vm13, %v2501_v21 }
 0x387   : > { %v1699_v37 = vpop.f32.mrf.mxu1 }
 0x388   : > { %2137 = vmatpush.bf16.msra.mxu0 %v2620_v3 }
 0x38a   : > { %v1852_v41 = vpop.f32.mrf.mxu2 }
 0x38b   : > { %v2490_v32 = vpack.c.bf16 %v1852_v41, %v1850_v40 }
 0x38c   : > { %2138 = vmatpush.bf16.msra.mxu0 %v2619_v0 }
 0x38f   : > { %v1701_v51 = vpop.f32.mrf.mxu1 }
 0x390   : > { %v2508_v30 = vpack.c.bf16 %v1701_v51, %v1699_v37  ;;  %2139 = vmatpush.bf16.msra.mxu0 %v2618_v5 }
 0x392   : > { %v1855_v23 = vpop.f32.mrf.mxu2 }
 0x394   : > { %2140 = vmatpush.bf16.msra.mxu0 %v2617_v56 }
 0x398   : > { %2141 = vmatpush.bf16.msra.mxu0 %v2616_v12 }
 0x39a   : > { %v1857_v27 = vpop.f32.mrf.mxu2 }
 0x39b   : > { %v2487_v60 = vpack.c.bf16 %v1857_v27, %v1855_v23 }
 0x39c   : > { %2142 = vmatpush.bf16.msra.mxu0 %v2615_v16 }
 0x39d   : > { %2488 = vmatpush.bf16.msk.msra.mxu3 %vm3242_vm7, %v2487_v60  ;;  %vm3989_vm7 = vmmov %vm3988_vm12 }
 0x39e   : > { %2517 = vmatmul.msk.bf16.vlgmr.msra.gmra.mxu2 %vm3989_vm7, %v1936_v50 }
 0x3a0   : > { %2143 = vmatpush.bf16.msra.mxu0 %v2614_v8 }
 0x3a1   : > { %2491 = vmatpush.bf16.msk.msra.mxu3 %vm3212_vm1, %v2490_v32  ;;  %vm1900_vm1 = vcmask 293888  }
 0x3a2   : > { %2503 = vmatmul.msk.bf16.vlgmr.msrb.gmra.mxu0 %vm1900_vm1, %v2496_v48 }
 0x3a4   : > { %2492 = vmatmul.msk.bf16.vlgmr.msra.gmra.mxu3 %vm3988_vm12, %v2485_v10  ;;  %2144 = vmatpush.bf16.msra.mxu0 %v2613_v22 }
 0x3a5   : > { %2054 = vmatpush.bf16.msrb.mxu3 %v2612_v26 }
 0x3a9   : > { %2055 = vmatpush.bf16.msrb.mxu3 %v2611_v13 }
 0x3ad   : > { %2056 = vmatpush.bf16.msrb.mxu3 %v2610_v58 }
 0x3b1   : > { %2057 = vmatpush.bf16.msrb.mxu3 %v2609_v24 }
 0x3b5   : > { %2058 = vmatpush.bf16.msrb.mxu3 %v2608_v2  ;;  %v1982_v31 = vpop.permute.xlu2 %1981 }
 0x3b9   : > { %2059 = vmatpush.bf16.msrb.mxu3 %v2607_v57 }
 0x3bd   : > { %2060 = vmatpush.bf16.msrb.mxu3 %v2606_v61 }
 0x3c1   : > { %2061 = vmatpush.bf16.msrb.mxu3 %v2605_v7 }
 0x3cb   : > { %v1927_v17 = vpop.permute.xlu0 %1926  ;;  %v1932_v14 = vpop.permute.xlu1 %1931 }
 0x3df   : > { %v1704_v45 = vpop.f32.mrf.mxu1 }
 0x3e7   : > { %v1706_v4 = vpop.f32.mrf.mxu1 }
 0x3e8   : > { %v2505_v43 = vpack.c.bf16 %v1706_v4, %v1704_v45 }
 0x3f1   : > { %v1709_v36 = vpop.f32.mrf.mxu1 }
 0x3f2   : > { %v1717_v39 = vsel %vm3257_vm10, %v1709_v36, 0.0 }
 0x3f3   : > { %v1942_v54 = vpack.c.bf16 %v1717_v39, %v1717_v39 }
 0x3f5   : > { %v1947_v28 = vsel %vm1904_vm3, %v1942_v54, 0 }
 0x3f6   : > { %1954 = vmatpush.bf16.msrb.mxu1 %v1947_v28 }
 0x3f9   : > { %v1711_v63 = vpop.f32.mrf.mxu1 }
 0x3fa   : > { %2506 = vmatpush.bf16.msk.msrb.mxu1 %vm3246_vm2, %v2505_v43 }
 0x3fe   : > { %2509 = vmatpush.bf16.msk.msrb.mxu1 %vm3919_vm13, %v2508_v30 }
 0x401   : > { %2510 = vmatmul.msk.bf16.vlgmr.msrb.gmra.mxu1 %vm1900_vm1, %v1939_v1 }
 0x41f   : > { %v1917_v34 = vpop.f32.mrf.mxu0 }
 0x421   : > { %v1974_v19 = vpop.f32.mrf.mxu2 }
 0x427   : > { %v1890_v38 = vpop.f32.mrf.mxu3  ;;  %v1919_v20 = vpop.f32.mrf.mxu0 }
 0x428   : > { %v1918_v9 = vadd.f32 %v1917_v34, %v1890_v38 }
 0x429   : > { %v1976_v33 = vpop.f32.mrf.mxu2 }
 0x42a   : > { %v1934_v25 = vadd.f32 %v1927_v17, %v1918_v9 }
 0x42f   : > { %v1892_v18 = vpop.f32.mrf.mxu3 }
 0x430   : > { %v1920_v11 = vadd.f32 %v1919_v20, %v1892_v18 }
 0x432   : > { %v1935_v47 = vadd.f32 %v1932_v14, %v1920_v11 }
 0x434   : > { %v1985_v29 = vpack.c.bf16 %v1935_v47, %v1934_v25 }
 0x436   : > { %2062 = vmatmul.bf16.vlgmr.msrb.gmra.mxu3 %v1985_v29 }
 0x47e   : > { %v1958_v15 = vpop.f32.mrf.mxu1 }
 0x47f   : > { %v1975_v35 = vadd.f32 %v1974_v19, %v1958_v15 }
 0x481   : > { %v1984_v44 = vadd.f32 %v1982_v31, %v1975_v35 }
 0x483   : > { %v2068_v62 = vpack.c.bf16 %v1984_v44, %v1984_v44 }
 0x485   : > { %2145 = vmatmul.bf16.vlgmr.msra.gmra.mxu0 %v2068_v62 }
 0x486   : > { %v1960_v21 = vpop.f32.mrf.mxu1 }
 0x487   : > { %2776 = shalt.err (!%p2773_p3)
}
 0x488   : > { %s2848_s27 = smov 128   ;;  %s2849_s9 = smov 8   ;;  %v2675_v40 = vld [vmem:[%s3845_s7] ss:$0 sm:$0xff]  ;;  %vm3992_vm2 = vmmov %vm3989_vm7  ;;  %vm2151_vm10 = vcmask 253952  }
 0x489   : > { %2624 = dma.vmem_to_hbm [thread:$0]  (%p2988_p5), %s2212_s26, 512, %s2214_s17, %s2179_s25, %s2848_s27, %s2848_s27, %s2849_s9   ;;  %vm3995_vm13 = vmmov %vm3992_vm2 }
 0x48a   : > { %s3991_s4 = sshll.u32 %s3033_s22, 4  ;;  %s2584_s20 = sshll.u32 %s2971_s1, 3 }
 0x48b   : > { %s647_s6 = scalar_lea.vmem %s3854_s16, %s3991_s4  ;;  %s2375_s26 = sshll.u32 %s3603_s23, 3 }
 0x48c   : > { %s3993_s2 = sld [smem:[#allocation22_spill]]  ;;  %s619_s21 = scalar_lea.vmem [#allocation2], %s2375_s26 }
 0x48d   : > { %s3994_s9 = sld [smem:[#allocation21_spill]]  ;;  %s2194_s28 = sshll.u32 %s619_s21, 4  ;;  %s2195_s28 = int_to_ptr.vmem [resolvable:$true] %s2194_s28 }
 0x48e   : > { %s2169_s1 = scalar_lea.sflag [#allocation3], %s3603_s23 }
 0x492   : > { %s2192_s22 = scalar_lea.hbm %s3993_s2, %s2584_s20  ;;  %s2797_s26 = scalar_lea.hbm %s3993_s2, 16 }
 0x493   : > { %v2676_v32 = vld [vmem:[%s3994_s9] ss:$0 sm:$0xff]  ;;  %s2196_s4 = sshll.u32 %s2192_s22, 4  ;;  %s2197_s4 = int_to_ptr.hbm [resolvable:$true] %s2196_s4 }
 0x494   : > { %s2791_s0 = sshra.s32 %s2197_s4, 4  ;;  %s2792_s0 = int_to_ptr.hbm [resolvable:$true] %s2791_s0 }
 0x495   : > { %s2793_s5 = scalar_lea.hbm %s2792_s0, 8  ;;  %p2798_p9 = scmp.lt.s32.totalorder %s2792_s0, %s3993_s2 }
 0x496   : > { %p2794_p4 = scmp.ne.s32.totalorder %s2792_s0, %s2793_s5  ;;  %p2799_p10 = scmp.lt.s32.totalorder %s2797_s26, %s2793_s5 }
 0x498   : > { %p2795_p7 = pnand %p2794_p4, %p2988_p5  ;;  %p2800_p11 = por %p2799_p10, %p2798_p9 }
 0x49a   : > { %p2796_p8 = pneg %p2795_p7 }
 0x49c   : > { %p2801_p12 = pnand %p2800_p11, %p2796_p8 }
 0x4b9   : > { %v2063_v41 = vpop.f32.mrf.mxu3 }
 0x4ba   : > { %v2064_v23 = vadd.f32 %v2675_v40, %v2063_v41 }
 0x4bc   : > { %2150 = vst.msk [vmem:[%s647_s6] sm:$0xff] %vm3992_vm2, %v2064_v23 }
 0x4c1   : > { %v2065_v27 = vpop.f32.mrf.mxu3 }
 0x4c2   : > { %v2066_v60 = vadd.f32 %v2675_v40, %v2065_v27 }
 0x4c4   : > { %2152 = vst.msk [vmem:[%s647_s6 + $0x8] sm:$0x1] %vm2151_vm10, %v2066_v60 }
 0x502   : > { %v2146_v42 = vpop.f32.mrf.mxu0 }
 0x503   : > { %v2147_v46 = vadd.f32 %v2676_v32, %v2146_v42 }
 0x505   : > { %2153 = vst.msk [vmem:[%s619_s21] sm:$0xff] %vm3995_vm13, %v2147_v46 }
 0x506   : > { %2804 = shalt.err (!%p2801_p12)
}
 0x507   : > { %2623 = dma.vmem_to_hbm [thread:$0]  (%p2988_p5), %s2195_s28, 128, %s2197_s4, %s2169_s1  }
 0x50a   : > { %v2148_v10 = vpop.f32.mrf.mxu0 }
 0x50b PF: > { %s3996_s23 = sld [smem:[#allocation10_spill]] }
 0x50c   : > { %s3997_s22 = sld [smem:[#allocation8_spill]] }
 0x511   : > { %p2634_p13 = scmp.ge.s32.totalorder %s3996_s23, 2 }
 0x512   : > { %s2236_s27 = sand.u32 1, %s3997_s22  }
 0x513   : > { %p2628_p0 = pnand %p2634_p13, %p2992_p6  ;;  %s2237_s9 = scalar_lea.sflag [#allocation3], %s2236_s27 }
 0x515   : > { %p2629_p1 = pneg %p2628_p0 }
 0x517   : > { %2822 = dma.done.wait (%p2629_p1), %s2237_s9, 128  }
 0x518   : > { %2824 = vsyncadd (%p2629_p1), %s2237_s9, 4294967168  ;;  %s2255_s21 = scalar_lea.sflag [#allocation5], %s2236_s27 }
 0x519   : > { %2826 = dma.done.wait (%p2629_p1), %s2255_s21, 512  }
 0x51a   : > { %2828 = vsyncadd (%p2629_p1), %s2255_s21, 4294966784  ;;  %s3999_s21 = sld [smem:[#allocation11_spill]]  ;;  %s4002_s0 = smov %s2835_s30 }
 0x51b   : > { %s4000_s3 = sld [smem:[#allocation9_spill]] }
 0x51c   : > { %s4001_s20 = sld [smem:[#allocation12_spill]] }
 0x520   : > { %p33_p5 = scmp.ge.s32.totalorder %s3999_s21, 4  }
 0x521   : > { %s4003_s30 = smov %s4000_s3 }
 0x522   :  { %35 = sbr.rel (!%p33_p5) target bundleno = 15 (0xf), region = 163 }
 0x527   :  { %2261 = vsyncpa [#allocation3], 1 }
 0x528   :  { %2263 = vsyncpa [#allocation3 + $0x1], 1 }
 0x529   :  { %2264 = vsyncpa [#allocation5], 1 }
 0x52a   :  { %2266 = vsyncpa [#allocation5 + $0x1], 1 }

</bundles_post_ra>
